<compile_context>
chip_gen: v5e
topology: v5e:2x2
jax: 0.10.0
libtpu: 0.0.40
codegen_flags: <defaults>
</compile_context>

<pallas_src>
import jax
import jax.numpy as jnp
from jax.experimental import pallas as pl
from jax.experimental.pallas import tpu as pltpu


def _round_up(x, m):
    return (x + m - 1) // m * m


_VMEM = pl.BlockSpec(memory_space=pltpu.MemorySpace.VMEM)


# --------------------------------------------------------------------------
# Fused decoder kernel: L stacked LSTM cells (seq_len = 1) + fc_out
# --------------------------------------------------------------------------
def _decoder_fused_kernel(x_ref, h_ref, c_ref, wih_ref, whh_ref, b_ref,
                          wout_ref, bout_ref,
                          pred_ref, h_out_ref, c_out_ref):
    L, _, Hp = h_ref.shape
    INP = x_ref.shape[1]

    x = x_ref[...]                                  # [Bp, INP] bf16
    h_last = None
    for l in range(L):                              # static unroll (L is small)
        h_prev = h_ref[l]                           # [Bp, Hp] f32
        c_prev = c_ref[l]                           # [Bp, Hp] f32
        # gates = x @ W_ih + h @ W_hh + (b_ih + b_hh)   (bf16 MXU, f32 acc)
        gates = (
            jnp.dot(x, wih_ref[l], preferred_element_type=jnp.float32)
            + jnp.dot(h_prev.astype(jnp.bfloat16), whh_ref[l],
                      preferred_element_type=jnp.float32)
            + b_ref[l]
        )                                           # [Bp, 4*Hp] f32
        # Lane-aligned gate slices (Hp is a multiple of 128). PyTorch order i,f,g,o.
        i = jax.nn.sigmoid(gates[:, 0 * Hp:1 * Hp])
        f = jax.nn.sigmoid(gates[:, 1 * Hp:2 * Hp])
        g = jnp.tanh(gates[:, 2 * Hp:3 * Hp])
        o = jax.nn.sigmoid(gates[:, 3 * Hp:4 * Hp])
        c_new = f * c_prev + i * g
        h_new = o * jnp.tanh(c_new)
        h_out_ref[l] = h_new
        c_out_ref[l] = c_new
        h_last = h_new
        if l + 1 < L:
            # Inter-layer dropout is identity (eval mode).
            if INP == Hp:
                x = h_new.astype(jnp.bfloat16)
            else:  # pad hidden up to the (larger) stacked input width
                x = jnp.concatenate(
                    [h_new, jnp.zeros((h_new.shape[0], INP - Hp), jnp.float32)],
                    axis=-1).astype(jnp.bfloat16)

    # fc_out on the last layer's hidden state (== output.squeeze(0)).
    pred_ref[...] = (
        jnp.dot(h_last.astype(jnp.bfloat16), wout_ref[...],
                preferred_element_type=jnp.float32)
        + bout_ref[...]
    )


# --------------------------------------------------------------------------
# Wrapper: embedding gather (glue) + one fused pallas_call
# --------------------------------------------------------------------------
def decoder_rnn_forward(kp, input_tokens, hidden, cell):
    """
    kp           : prepared (padded / stacked / bf16) kernel params
    input_tokens : int32 [B]   (PyTorch `input` before unsqueeze(0))
    hidden, cell : float32 [L, B, H]
    returns (prediction [B, V], hidden [L, B, H], cell [L, B, H])
    """
    B = input_tokens.shape[0]
    L, _, H = hidden.shape
    V = kp["V"]
    Hp = kp["w_hh"].shape[1]
    INP = kp["w_ih"].shape[1]
    Vp = kp["w_out"].shape[1]
    Bp = _round_up(max(B, 8), 8)

    # Embedding lookup (gather) -- JAX glue; dropout is identity in eval mode.
    x = jnp.take(kp["embedding"], input_tokens, axis=0)            # [B, emb] f32
    emb = x.shape[1]

    # Zero-pad to lane/sublane-aligned shapes (padding stays exactly zero
    # through the LSTM recurrence and is sliced off below). Fast-path skips
    # the extra copies when inputs are already aligned.
    if (Bp, INP) == (B, emb):
        x_p = x.astype(jnp.bfloat16)
    else:
        x_p = jnp.zeros((Bp, INP), jnp.bfloat16).at[:B, :emb].set(
            x.astype(jnp.bfloat16))
    if (Bp, Hp) == (B, H):
        h_p, c_p = hidden, cell
    else:
        h_p = jnp.zeros((L, Bp, Hp), jnp.float32).at[:, :B, :H].set(hidden)
        c_p = jnp.zeros((L, Bp, Hp), jnp.float32).at[:, :B, :H].set(cell)

    pred_p, h_out_p, c_out_p = pl.pallas_call(
        _decoder_fused_kernel,
        out_shape=(jax.ShapeDtypeStruct((Bp, Vp), jnp.float32),
                   jax.ShapeDtypeStruct((L, Bp, Hp), jnp.float32),
                   jax.ShapeDtypeStruct((L, Bp, Hp), jnp.float32)),
        in_specs=[_VMEM] * 8,
        out_specs=(_VMEM, _VMEM, _VMEM),
        # Update hidden / cell in place (no fresh HBM buffers per decode step).
        input_output_aliases={1: 1, 2: 2},
    )(x_p, h_p, c_p, kp["w_ih"], kp["w_hh"], kp["b"], kp["w_out"], kp["b_out"])

    prediction = pred_p[:B, :V]
    new_hidden = h_out_p[:, :B, :H]
    new_cell = c_out_p[:, :B, :H]
    return prediction, new_hidden, new_cell


# --------------------------------------------------------------------------
# Parameter init (logical / PyTorch-shaped, f32) and kernel-layout packing
# --------------------------------------------------------------------------
def init_params(key, output_dim, emb_dim, hid_dim, n_layers):
    keys = jax.random.split(key, 4 + 4 * n_layers)
    scale = 0.1
    params = {
        "embedding": scale * jax.random.normal(keys[0], (output_dim, emb_dim), jnp.float32),
        "w_out": scale * jax.random.normal(keys[1], (hid_dim, output_dim), jnp.float32),
        "b_out": scale * jax.random.normal(keys[2], (1, output_dim), jnp.float32),
        "w_ih": [],
        "w_hh": [],
        "b": [],
    }
    for l in range(n_layers):
        in_dim = emb_dim if l == 0 else hid_dim
        k = keys[3 + 4 * l: 3 + 4 * (l + 1)]
        # PyTorch: weight_ih_l{l} is [4H, in_dim]; we store the transpose.
        params["w_ih"].append(scale * jax.random.normal(k[0], (in_dim, 4 * hid_dim), jnp.float32))
        params["w_hh"].append(scale * jax.random.normal(k[1], (hid_dim, 4 * hid_dim), jnp.float32))
        b_ih = scale * jax.random.normal(k[2], (4 * hid_dim,), jnp.float32)
        b_hh = scale * jax.random.normal(k[3], (4 * hid_dim,), jnp.float32)
        params["b"].append((b_ih + b_hh).reshape(1, 4 * hid_dim))
    return params


def prepare_kernel_params(params):
    """Stack per-layer weights, pad to (8,128)-aligned tiles, cast matmul
    operands to bf16. Done once; not on the decode hot path."""
    emb = params["embedding"].shape[1]
    H = params["w_hh"][0].shape[0]
    V = params["w_out"].shape[1]
    L = len(params["w_ih"])
    Hp = _round_up(H, 128)
    INP = max(_round_up(emb, 128), Hp)
    Vp = _round_up(V, 128)

    def pack_gate_cols(w):  # [rows, 4H] -> [rows, 4Hp], gate k at cols [k*Hp, k*Hp+H)
        rows = w.shape[0]
        out = jnp.zeros((rows, 4 * Hp), jnp.float32)
        for k in range(4):
            out = out.at[:, k * Hp:k * Hp + H].set(w[:, k * H:(k + 1) * H])
        return out

    w_ih = jnp.zeros((L, INP, 4 * Hp), jnp.float32)
    w_hh = jnp.zeros((L, Hp, 4 * Hp), jnp.float32)
    b = jnp.zeros((L, 1, 4 * Hp), jnp.float32)
    for l in range(L):
        in_dim = params["w_ih"][l].shape[0]
        w_ih = w_ih.at[l, :in_dim, :].set(pack_gate_cols(params["w_ih"][l]))
        w_hh = w_hh.at[l, :H, :].set(pack_gate_cols(params["w_hh"][l]))
        b = b.at[l, :, :].set(pack_gate_cols(params["b"][l]))
    w_out = jnp.zeros((Hp, Vp), jnp.float32).at[:H, :V].set(params["w_out"])
    b_out = jnp.zeros((1, Vp), jnp.float32).at[:, :V].set(params["b_out"])

    return {
        "embedding": params["embedding"],          # f32 gather table (JAX glue)
        "w_ih": w_ih.astype(jnp.bfloat16),
        "w_hh": w_hh.astype(jnp.bfloat16),
        "b": b,                                    # f32 (added post-accumulate)
        "w_out": w_out.astype(jnp.bfloat16),
        "b_out": b_out,                            # f32
        "H": H,
        "V": V,
    }


# --------------------------------------------------------------------------
# Pure-JAX f32 reference (PyTorch eval-mode semantics) for validation
# --------------------------------------------------------------------------
def decoder_rnn_reference(params, tokens, hidden, cell):
    x = params["embedding"][tokens]
    L, _, H = hidden.shape
    hs, cs = [], []
    for l in range(L):
        gates = x @ params["w_ih"][l] + hidden[l] @ params["w_hh"][l] + params["b"][l]
        i = jax.nn.sigmoid(gates[:, 0 * H:1 * H])
        f = jax.nn.sigmoid(gates[:, 1 * H:2 * H])
        g = jnp.tanh(gates[:, 2 * H:3 * H])
        o = jax.nn.sigmoid(gates[:, 3 * H:4 * H])
        c = f * cell[l] + i * g
        h = o * jnp.tanh(c)
        hs.append(h)
        cs.append(c)
        x = h
    pred = x @ params["w_out"] + params["b_out"]
    return pred, jnp.stack(hs), jnp.stack(cs)


if __name__ == "__main__":
    OUTPUT_DIM = 64   # vocab size
    EMB_DIM = 32
    HID_DIM = 32
    N_LAYERS = 2
    BATCH = 2

    key = jax.random.PRNGKey(0)
    k_par, k_tok, k_h, k_c = jax.random.split(key, 4)

    params = init_params(k_par, OUTPUT_DIM, EMB_DIM, HID_DIM, N_LAYERS)
    kparams = prepare_kernel_params(params)

    input_tokens = jax.random.randint(k_tok, (BATCH,), 0, OUTPUT_DIM, dtype=jnp.int32)
    hidden = jax.random.normal(k_h, (N_LAYERS, BATCH, HID_DIM), jnp.float32)
    cell = jax.random.normal(k_c, (N_LAYERS, BATCH, HID_DIM), jnp.float32)

    # jit with prepared params captured in the closure: the embedding gather,
    # padding and output slicing fuse into one compiled step around the kernel.
    fwd = jax.jit(lambda toks, h, c: decoder_rnn_forward(kparams, toks, h, c))

    prediction, new_hidden, new_cell = fwd(input_tokens, hidden, cell)
    jax.block_until_ready((prediction, new_hidden, new_cell))

    assert prediction.shape == (BATCH, OUTPUT_DIM)
    assert new_hidden.shape == (N_LAYERS, BATCH, HID_DIM)
    assert new_cell.shape == (N_LAYERS, BATCH, HID_DIM)

    # Validate against f32 reference (bf16 matmul operands => loose tolerance).
    ref_pred, ref_h, ref_c = decoder_rnn_reference(params, input_tokens, hidden, cell)
    assert jnp.allclose(prediction, ref_pred, atol=3e-2, rtol=3e-2)
    assert jnp.allclose(new_hidden, ref_h, atol=3e-2, rtol=3e-2)
    assert jnp.allclose(new_cell, ref_c, atol=3e-2, rtol=3e-2)

    print("KERNEL_OK")
</pallas_src>

<mosaic_0001>
module attributes {stable_mosaic.version = 11 : i64} {
  func.func @_decoder_fused_kernel(%arg0: memref<8x128xbf16, #tpu.memory_space<vmem>>, %arg1: memref<2x8x128xf32, #tpu.memory_space<vmem>>, %arg2: memref<2x8x128xf32, #tpu.memory_space<vmem>>, %arg3: memref<2x128x512xbf16, #tpu.memory_space<vmem>>, %arg4: memref<2x128x512xbf16, #tpu.memory_space<vmem>>, %arg5: memref<2x1x512xf32, #tpu.memory_space<vmem>>, %arg6: memref<128x128xbf16, #tpu.memory_space<vmem>>, %arg7: memref<1x128xf32, #tpu.memory_space<vmem>>, %arg8: memref<8x128xf32, #tpu.memory_space<vmem>>, %arg9: memref<2x8x128xf32, #tpu.memory_space<vmem>>, %arg10: memref<2x8x128xf32, #tpu.memory_space<vmem>>) attributes {dimension_semantics = [], scalar_prefetch = 0 : i64, scratch_operands = 0 : i64, tpu.core_type = #tpu.core_type<tc>} {
    %c0 = arith.constant 0 : index
    %c0_0 = arith.constant 0 : index
    %0 = vector.load %arg0[%c0, %c0_0] : memref<8x128xbf16, #tpu.memory_space<vmem>>, vector<8x128xbf16>
    %c0_1 = arith.constant 0 : index
    %c0_2 = arith.constant 0 : index
    %c0_3 = arith.constant 0 : index
    %1 = vector.load %arg1[%c0_1, %c0_2, %c0_3] : memref<2x8x128xf32, #tpu.memory_space<vmem>>, vector<1x8x128xf32>
    %2 = vector.shape_cast %1 : vector<1x8x128xf32> to vector<8x128xf32>
    %c0_4 = arith.constant 0 : index
    %c0_5 = arith.constant 0 : index
    %c0_6 = arith.constant 0 : index
    %3 = vector.load %arg2[%c0_4, %c0_5, %c0_6] : memref<2x8x128xf32, #tpu.memory_space<vmem>>, vector<1x8x128xf32>
    %4 = vector.shape_cast %3 : vector<1x8x128xf32> to vector<8x128xf32>
    %c0_7 = arith.constant 0 : index
    %c0_8 = arith.constant 0 : index
    %c0_9 = arith.constant 0 : index
    %5 = vector.load %arg3[%c0_7, %c0_8, %c0_9] : memref<2x128x512xbf16, #tpu.memory_space<vmem>>, vector<1x128x512xbf16>
    %6 = vector.shape_cast %5 : vector<1x128x512xbf16> to vector<128x512xbf16>
    %cst = arith.constant dense<0.000000e+00> : vector<8x512xf32>
    %7 = tpu.matmul %0, %6, %cst {dimension_numbers = #tpu.dot_dimension_numbers<[1], [0], [0], [1], [0, 0, 1, 1], [], []>} : vector<8x128xbf16>, vector<128x512xbf16>, vector<8x512xf32> -> vector<8x512xf32>
    %8 = arith.truncf %2 : vector<8x128xf32> to vector<8x128xbf16>
    %c0_10 = arith.constant 0 : index
    %c0_11 = arith.constant 0 : index
    %c0_12 = arith.constant 0 : index
    %9 = vector.load %arg4[%c0_10, %c0_11, %c0_12] : memref<2x128x512xbf16, #tpu.memory_space<vmem>>, vector<1x128x512xbf16>
    %10 = vector.shape_cast %9 : vector<1x128x512xbf16> to vector<128x512xbf16>
    %cst_13 = arith.constant dense<0.000000e+00> : vector<8x512xf32>
    %11 = tpu.matmul %8, %10, %cst_13 {dimension_numbers = #tpu.dot_dimension_numbers<[1], [0], [0], [1], [0, 0, 1, 1], [], []>} : vector<8x128xbf16>, vector<128x512xbf16>, vector<8x512xf32> -> vector<8x512xf32>
    %12 = arith.addf %7, %11 : vector<8x512xf32>
    %c0_14 = arith.constant 0 : index
    %c0_15 = arith.constant 0 : index
    %c0_16 = arith.constant 0 : index
    %13 = vector.load %arg5[%c0_14, %c0_15, %c0_16] : memref<2x1x512xf32, #tpu.memory_space<vmem>>, vector<1x1x512xf32>
    %14 = vector.shape_cast %13 : vector<1x1x512xf32> to vector<1x512xf32>
    %15 = vector.broadcast %14 : vector<1x512xf32> to vector<8x512xf32>
    %16 = arith.addf %12, %15 : vector<8x512xf32>
    %17 = vector.extract_strided_slice %16 {offsets = [0, 0], sizes = [8, 128], strides = [1, 1]} : vector<8x512xf32> to vector<8x128xf32>
    %18 = arith.negf %17 : vector<8x128xf32>
    %19 = math.exp %18 : vector<8x128xf32>
    %cst_17 = arith.constant 1.000000e+00 : f32
    %20 = vector.broadcast %cst_17 : f32 to vector<8x128xf32>
    %21 = arith.addf %20, %19 : vector<8x128xf32>
    %22 = arith.divf %20, %21 : vector<8x128xf32>
    %23 = vector.extract_strided_slice %16 {offsets = [0, 128], sizes = [8, 128], strides = [1, 1]} : vector<8x512xf32> to vector<8x128xf32>
    %24 = arith.negf %23 : vector<8x128xf32>
    %25 = math.exp %24 : vector<8x128xf32>
    %cst_18 = arith.constant 1.000000e+00 : f32
    %26 = vector.broadcast %cst_18 : f32 to vector<8x128xf32>
    %27 = arith.addf %26, %25 : vector<8x128xf32>
    %28 = arith.divf %26, %27 : vector<8x128xf32>
    %29 = vector.extract_strided_slice %16 {offsets = [0, 256], sizes = [8, 128], strides = [1, 1]} : vector<8x512xf32> to vector<8x128xf32>
    %30 = math.tanh %29 : vector<8x128xf32>
    %31 = vector.extract_strided_slice %16 {offsets = [0, 384], sizes = [8, 128], strides = [1, 1]} : vector<8x512xf32> to vector<8x128xf32>
    %32 = arith.negf %31 : vector<8x128xf32>
    %33 = math.exp %32 : vector<8x128xf32>
    %cst_19 = arith.constant 1.000000e+00 : f32
    %34 = vector.broadcast %cst_19 : f32 to vector<8x128xf32>
    %35 = arith.addf %34, %33 : vector<8x128xf32>
    %36 = arith.divf %34, %35 : vector<8x128xf32>
    %37 = arith.mulf %28, %4 : vector<8x128xf32>
    %38 = arith.mulf %22, %30 : vector<8x128xf32>
    %39 = arith.addf %37, %38 : vector<8x128xf32>
    %40 = math.tanh %39 : vector<8x128xf32>
    %41 = arith.mulf %36, %40 : vector<8x128xf32>
    %c0_20 = arith.constant 0 : index
    %c0_21 = arith.constant 0 : index
    %c0_22 = arith.constant 0 : index
    %42 = vector.load %arg9[%c0_20, %c0_21, %c0_22] : memref<2x8x128xf32, #tpu.memory_space<vmem>>, vector<1x8x128xf32>
    %43 = vector.shape_cast %42 : vector<1x8x128xf32> to vector<8x128xf32>
    %44 = vector.shape_cast %41 : vector<8x128xf32> to vector<1x8x128xf32>
    tpu.vector_store %arg9[%c0_20, %c0_21, %c0_22], %44 {strides = array<i32>} : memref<2x8x128xf32, #tpu.memory_space<vmem>>, vector<1x8x128xf32>,
    %c0_23 = arith.constant 0 : index
    %c0_24 = arith.constant 0 : index
    %c0_25 = arith.constant 0 : index
    %45 = vector.load %arg10[%c0_23, %c0_24, %c0_25] : memref<2x8x128xf32, #tpu.memory_space<vmem>>, vector<1x8x128xf32>
    %46 = vector.shape_cast %45 : vector<1x8x128xf32> to vector<8x128xf32>
    %47 = vector.shape_cast %39 : vector<8x128xf32> to vector<1x8x128xf32>
    tpu.vector_store %arg10[%c0_23, %c0_24, %c0_25], %47 {strides = array<i32>} : memref<2x8x128xf32, #tpu.memory_space<vmem>>, vector<1x8x128xf32>,
    %48 = arith.truncf %41 : vector<8x128xf32> to vector<8x128xbf16>
    %c1 = arith.constant 1 : index
    %c0_26 = arith.constant 0 : index
    %c0_27 = arith.constant 0 : index
    %49 = vector.load %arg1[%c1, %c0_26, %c0_27] : memref<2x8x128xf32, #tpu.memory_space<vmem>>, vector<1x8x128xf32>
    %50 = vector.shape_cast %49 : vector<1x8x128xf32> to vector<8x128xf32>
    %c1_28 = arith.constant 1 : index
    %c0_29 = arith.constant 0 : index
    %c0_30 = arith.constant 0 : index
    %51 = vector.load %arg2[%c1_28, %c0_29, %c0_30] : memref<2x8x128xf32, #tpu.memory_space<vmem>>, vector<1x8x128xf32>
    %52 = vector.shape_cast %51 : vector<1x8x128xf32> to vector<8x128xf32>
    %c1_31 = arith.constant 1 : index
    %c0_32 = arith.constant 0 : index
    %c0_33 = arith.constant 0 : index
    %53 = vector.load %arg3[%c1_31, %c0_32, %c0_33] : memref<2x128x512xbf16, #tpu.memory_space<vmem>>, vector<1x128x512xbf16>
    %54 = vector.shape_cast %53 : vector<1x128x512xbf16> to vector<128x512xbf16>
    %cst_34 = arith.constant dense<0.000000e+00> : vector<8x512xf32>
    %55 = tpu.matmul %48, %54, %cst_34 {dimension_numbers = #tpu.dot_dimension_numbers<[1], [0], [0], [1], [0, 0, 1, 1], [], []>} : vector<8x128xbf16>, vector<128x512xbf16>, vector<8x512xf32> -> vector<8x512xf32>
    %56 = arith.truncf %50 : vector<8x128xf32> to vector<8x128xbf16>
    %c1_35 = arith.constant 1 : index
    %c0_36 = arith.constant 0 : index
    %c0_37 = arith.constant 0 : index
    %57 = vector.load %arg4[%c1_35, %c0_36, %c0_37] : memref<2x128x512xbf16, #tpu.memory_space<vmem>>, vector<1x128x512xbf16>
    %58 = vector.shape_cast %57 : vector<1x128x512xbf16> to vector<128x512xbf16>
    %cst_38 = arith.constant dense<0.000000e+00> : vector<8x512xf32>
    %59 = tpu.matmul %56, %58, %cst_38 {dimension_numbers = #tpu.dot_dimension_numbers<[1], [0], [0], [1], [0, 0, 1, 1], [], []>} : vector<8x128xbf16>, vector<128x512xbf16>, vector<8x512xf32> -> vector<8x512xf32>
    %60 = arith.addf %55, %59 : vector<8x512xf32>
    %c1_39 = arith.constant 1 : index
    %c0_40 = arith.constant 0 : index
    %c0_41 = arith.constant 0 : index
    %61 = vector.load %arg5[%c1_39, %c0_40, %c0_41] : memref<2x1x512xf32, #tpu.memory_space<vmem>>, vector<1x1x512xf32>
    %62 = vector.shape_cast %61 : vector<1x1x512xf32> to vector<1x512xf32>
    %63 = vector.broadcast %62 : vector<1x512xf32> to vector<8x512xf32>
    %64 = arith.addf %60, %63 : vector<8x512xf32>
    %65 = vector.extract_strided_slice %64 {offsets = [0, 0], sizes = [8, 128], strides = [1, 1]} : vector<8x512xf32> to vector<8x128xf32>
    %66 = arith.negf %65 : vector<8x128xf32>
    %67 = math.exp %66 : vector<8x128xf32>
    %cst_42 = arith.constant 1.000000e+00 : f32
    %68 = vector.broadcast %cst_42 : f32 to vector<8x128xf32>
    %69 = arith.addf %68, %67 : vector<8x128xf32>
    %70 = arith.divf %68, %69 : vector<8x128xf32>
    %71 = vector.extract_strided_slice %64 {offsets = [0, 128], sizes = [8, 128], strides = [1, 1]} : vector<8x512xf32> to vector<8x128xf32>
    %72 = arith.negf %71 : vector<8x128xf32>
    %73 = math.exp %72 : vector<8x128xf32>
    %cst_43 = arith.constant 1.000000e+00 : f32
    %74 = vector.broadcast %cst_43 : f32 to vector<8x128xf32>
    %75 = arith.addf %74, %73 : vector<8x128xf32>
    %76 = arith.divf %74, %75 : vector<8x128xf32>
    %77 = vector.extract_strided_slice %64 {offsets = [0, 256], sizes = [8, 128], strides = [1, 1]} : vector<8x512xf32> to vector<8x128xf32>
    %78 = math.tanh %77 : vector<8x128xf32>
    %79 = vector.extract_strided_slice %64 {offsets = [0, 384], sizes = [8, 128], strides = [1, 1]} : vector<8x512xf32> to vector<8x128xf32>
    %80 = arith.negf %79 : vector<8x128xf32>
    %81 = math.exp %80 : vector<8x128xf32>
    %cst_44 = arith.constant 1.000000e+00 : f32
    %82 = vector.broadcast %cst_44 : f32 to vector<8x128xf32>
    %83 = arith.addf %82, %81 : vector<8x128xf32>
    %84 = arith.divf %82, %83 : vector<8x128xf32>
    %85 = arith.mulf %76, %52 : vector<8x128xf32>
    %86 = arith.mulf %70, %78 : vector<8x128xf32>
    %87 = arith.addf %85, %86 : vector<8x128xf32>
    %88 = math.tanh %87 : vector<8x128xf32>
    %89 = arith.mulf %84, %88 : vector<8x128xf32>
    %c1_45 = arith.constant 1 : index
    %c0_46 = arith.constant 0 : index
    %c0_47 = arith.constant 0 : index
    %90 = vector.load %arg9[%c1_45, %c0_46, %c0_47] : memref<2x8x128xf32, #tpu.memory_space<vmem>>, vector<1x8x128xf32>
    %91 = vector.shape_cast %90 : vector<1x8x128xf32> to vector<8x128xf32>
    %92 = vector.shape_cast %89 : vector<8x128xf32> to vector<1x8x128xf32>
    tpu.vector_store %arg9[%c1_45, %c0_46, %c0_47], %92 {strides = array<i32>} : memref<2x8x128xf32, #tpu.memory_space<vmem>>, vector<1x8x128xf32>,
    %c1_48 = arith.constant 1 : index
    %c0_49 = arith.constant 0 : index
    %c0_50 = arith.constant 0 : index
    %93 = vector.load %arg10[%c1_48, %c0_49, %c0_50] : memref<2x8x128xf32, #tpu.memory_space<vmem>>, vector<1x8x128xf32>
    %94 = vector.shape_cast %93 : vector<1x8x128xf32> to vector<8x128xf32>
    %95 = vector.shape_cast %87 : vector<8x128xf32> to vector<1x8x128xf32>
    tpu.vector_store %arg10[%c1_48, %c0_49, %c0_50], %95 {strides = array<i32>} : memref<2x8x128xf32, #tpu.memory_space<vmem>>, vector<1x8x128xf32>,
    %96 = arith.truncf %89 : vector<8x128xf32> to vector<8x128xbf16>
    %c0_51 = arith.constant 0 : index
    %c0_52 = arith.constant 0 : index
    %97 = vector.load %arg6[%c0_51, %c0_52] : memref<128x128xbf16, #tpu.memory_space<vmem>>, vector<128x128xbf16>
    %cst_53 = arith.constant dense<0.000000e+00> : vector<8x128xf32>
    %98 = tpu.matmul %96, %97, %cst_53 {dimension_numbers = #tpu.dot_dimension_numbers<[1], [0], [0], [1], [0, 0, 1, 1], [], []>} : vector<8x128xbf16>, vector<128x128xbf16>, vector<8x128xf32> -> vector<8x128xf32>
    %c0_54 = arith.constant 0 : index
    %c0_55 = arith.constant 0 : index
    %99 = vector.load %arg7[%c0_54, %c0_55] : memref<1x128xf32, #tpu.memory_space<vmem>>, vector<1x128xf32>
    %100 = vector.broadcast %99 : vector<1x128xf32> to vector<8x128xf32>
    %101 = arith.addf %98, %100 : vector<8x128xf32>
    %c0_56 = arith.constant 0 : index
    %c0_57 = arith.constant 0 : index
    %102 = vector.load %arg8[%c0_56, %c0_57] : memref<8x128xf32, #tpu.memory_space<vmem>>, vector<8x128xf32>
    tpu.vector_store %arg8[%c0_56, %c0_57], %101 {strides = array<i32>} : memref<8x128xf32, #tpu.memory_space<vmem>>, vector<8x128xf32>,
    return
  }
}

</mosaic_0001>

<bundles_post_ra>
// kernel: _lambda_.1
= control target key start
LH: loop header
LB: loop body
LE: loop exit
PB: predicated region body
PF: predicated region fallthrough
CT: control target
= control target key end

     0   :  { %16 = vsyncpa [#allocation3], 0  ;;  %s2260_s0 = inlined_call_operand.vmem [shape: bf16[8,128], index: 0, kind: input, shape index: {}]   ;;  %s2261_s1 = inlined_call_operand.vmem [shape: f32[2,8,128], index: 1, kind: input, shape index: {}, may-alias: {1,9}]   ;;  %s2262_s2 = inlined_call_operand.vmem [shape: f32[2,8,128], index: 2, kind: input, shape index: {}, may-alias: {2,10}]   ;;  %s2263_s3 = inlined_call_operand.hbm [shape: bf16[2,128,512], index: 3, kind: input, shape index: {}]   ;;  %s2264_s4 = inlined_call_operand.hbm [shape: bf16[2,128,512], index: 4, kind: input, shape index: {}]   ;;  %s2265_s5 = inlined_call_operand.vmem [shape: f32[2,1,512], index: 5, kind: input, shape index: {}]   ;;  %s2266_s6 = inlined_call_operand.hbm [shape: bf16[128,128], index: 6, kind: input, shape index: {}]   ;;  %s2267_s7 = inlined_call_operand.vmem [shape: f32[1,128], index: 7, kind: input, shape index: {}]   ;;  %s2268_s8 = inlined_call_operand.vmem [shape: f32[8,128], index: 8, kind: output, shape index: {0}]   ;;  %s2269_s9 = inlined_call_operand.vmem [shape: f32[2,8,128], index: 9, kind: output, shape index: {1}, may-alias: {1,9}]   ;;  %s2270_s10 = inlined_call_operand.vmem [shape: f32[2,8,128], index: 10, kind: output, shape index: {2}, may-alias: {2,10}]  }
   0x1   :  { %17 = vsyncpa [#allocation5], 0  ;;  %s41_s15 = sshll.u32 %s2264_s4, 4  ;;  %s2132_s16 = smov [#allocation4]   ;;  %s42_s15 = int_to_ptr.hbm [resolvable:$true] %s41_s15 }
   0x2   :  { %s43_s17 = sshll.u32 %s2132_s16, 4  ;;  %s28_s20 = sshll.u32 %s2263_s3, 4  ;;  %s44_s17 = int_to_ptr.vmem [resolvable:$true] %s43_s17  ;;  %s29_s20 = int_to_ptr.hbm [resolvable:$true] %s28_s20 }
   0x3   :  { %s2133_s21 = smov 256   ;;  %s2134_s22 = smov 16  }
   0x4   :  { %49 = dma.hbm_to_vmem [thread:$0]  %s42_s15, 8192, %s44_s17, [#allocation5], %s2133_s21, %s2133_s21, %s2134_s22  }
   0x5   :  { %s2135_s23 = smov [#allocation2]   ;;  %s56_s27 = sshll.u32 %s2266_s6, 4  ;;  %s57_s27 = int_to_ptr.hbm [resolvable:$true] %s56_s27 }
   0x6   :  { %s30_s24 = sshll.u32 %s2135_s23, 4  ;;  %s2136_s4 = smov [#allocation6]   ;;  %s31_s24 = int_to_ptr.vmem [resolvable:$true] %s30_s24 }
   0x7   :  { %36 = dma.hbm_to_vmem [thread:$0]  %s29_s20, 8192, %s31_s24, [#allocation3], %s2133_s21, %s2133_s21, %s2134_s22  }
   0x8   :  { %s58_s28 = sshll.u32 %s2136_s4, 4  ;;  %s2137_s29 = smov 64   ;;  %s59_s28 = int_to_ptr.vmem [resolvable:$true] %s58_s28 }
   0x9   :  { %s2138_s30 = smov 4  }
   0xa   :  { %64 = dma.hbm_to_vmem [thread:$0]  %s57_s27, 1024, %s59_s28, [#allocation5], %s2137_s29, %s2137_s29, %s2138_s30  }
   0xb   :  { %2128 = dma.done.wait [#allocation3], 8192  }
   0xc   :  { %2129 = vsyncadd [#allocation3], 4294959104 }
   0xd   :  { %2130 = dma.done.wait [#allocation5], 9216  }
   0xe   :  { %2131 = vsyncadd [#allocation5], 4294958080  ;;  %v1439_v0 = vld [vmem:[#allocation4 + $0xe0] sm:$0xf]  ;;  %v1942_v1 = vld [vmem:[#allocation4 + $0xec] sm:$0xf0] }
   0xf   :  { %v1940_v2 = vld [vmem:[#allocation4 + $0xe4] sm:$0xf]  ;;  %v1440_v3 = vor.u32 %v1942_v1, %v1439_v0  ;;  %v1441_v4 = vld [vmem:[#allocation4 + $0xf0] sm:$0xf0]  ;;  %v1447_v5 = vld [vmem:[#allocation4 + $0xe8] sm:$0xf] }
  0x10   :  { %v1943_v6 = vld [vmem:[#allocation4 + $0xf4] sm:$0xf0]  ;;  %v1444_v7 = vor.u32 %v1940_v2, %v1441_v4  ;;  %v1941_v9 = vld [vmem:[#allocation4 + $0xec] sm:$0xf]  ;;  %v1449_v10 = vld [vmem:[#allocation4 + $0xf8] sm:$0xf0] }
  0x11   :  { %v1448_v8 = vor.u32 %v1943_v6, %v1447_v5  ;;  %v1423_v11 = vld [vmem:[#allocation4 + $0xc0] sm:$0xf]  ;;  %307 = vmatpush.bf16.msra.mxu0 %v1440_v3  ;;  %v1452_v12 = vor.u32 %v1941_v9, %v1449_v10  ;;  %v1938_v13 = vld [vmem:[#allocation4 + $0xcc] sm:$0xf0]  ;;  %v1936_v14 = vld [vmem:[#allocation4 + $0xc4] sm:$0xf] }
  0x12   :  { %v1425_v15 = vld [vmem:[#allocation4 + $0xd0] sm:$0xf0]  ;;  %320 = vmatpush.bf16.msra.mxu1 %v1444_v7  ;;  %v1424_v16 = vor.u32 %v1938_v13, %v1423_v11  ;;  %v1431_v18 = vld [vmem:[#allocation4 + $0xc8] sm:$0xf]  ;;  %v1939_v19 = vld [vmem:[#allocation4 + $0xd4] sm:$0xf0] }
  0x13   :  { %333 = vmatpush.bf16.msra.mxu2 %v1448_v8  ;;  %v1428_v17 = vor.u32 %v1936_v14, %v1425_v15  ;;  %v1937_v20 = vld [vmem:[#allocation4 + $0xcc] sm:$0xf]  ;;  %346 = vmatpush.bf16.msra.mxu3 %v1452_v12  ;;  %v1432_v21 = vor.u32 %v1939_v19, %v1431_v18  ;;  %v1433_v22 = vld [vmem:[#allocation4 + $0xd8] sm:$0xf0]  ;;  %v1407_v23 = vld [vmem:[#allocation4 + $0xa0] sm:$0xf] }
  0x14   :  { %v1934_v24 = vld [vmem:[#allocation4 + $0xac] sm:$0xf0]  ;;  %v1436_v25 = vor.u32 %v1937_v20, %v1433_v22  ;;  %v1932_v26 = vld [vmem:[#allocation4 + $0xa4] sm:$0xf]  ;;  %v1409_v27 = vld [vmem:[#allocation4 + $0xb0] sm:$0xf0] }
  0x15   :  { %v1415_v28 = vld [vmem:[#allocation4 + $0xa8] sm:$0xf]  ;;  %308 = vmatpush.bf16.msra.mxu0 %v1424_v16  ;;  %v1408_v29 = vor.u32 %v1934_v24, %v1407_v23  ;;  %v1935_v30 = vld [vmem:[#allocation4 + $0xb4] sm:$0xf0]  ;;  %v1933_v31 = vld [vmem:[#allocation4 + $0xac] sm:$0xf]  ;;  %v1412_v33 = vor.u32 %v1932_v26, %v1409_v27 }
  0x16   :  { %v1417_v32 = vld [vmem:[#allocation4 + $0xb8] sm:$0xf0]  ;;  %321 = vmatpush.bf16.msra.mxu1 %v1428_v17  ;;  %v1416_v34 = vor.u32 %v1935_v30, %v1415_v28  ;;  %v1391_v35 = vld [vmem:[#allocation4 + $0x80] sm:$0xf]  ;;  %v1930_v36 = vld [vmem:[#allocation4 + $0x8c] sm:$0xf0] }
  0x17   :  { %334 = vmatpush.bf16.msra.mxu2 %v1432_v21  ;;  %v1928_v37 = vld [vmem:[#allocation4 + $0x84] sm:$0xf]  ;;  %347 = vmatpush.bf16.msra.mxu3 %v1436_v25  ;;  %v1420_v38 = vor.u32 %v1933_v31, %v1417_v32  ;;  %v1393_v39 = vld [vmem:[#allocation4 + $0x90] sm:$0xf0]  ;;  %v1399_v40 = vld [vmem:[#allocation4 + $0x88] sm:$0xf]  ;;  %v1392_v44 = vor.u32 %v1930_v36, %v1391_v35 }
  0x18   :  { %v1931_v41 = vld [vmem:[#allocation4 + $0x94] sm:$0xf0]  ;;  %v1929_v42 = vld [vmem:[#allocation4 + $0x8c] sm:$0xf]  ;;  %v1401_v43 = vld [vmem:[#allocation4 + $0x98] sm:$0xf0]  ;;  %v1396_v45 = vor.u32 %v1928_v37, %v1393_v39 }
  0x19   :  { %309 = vmatpush.bf16.msra.mxu0 %v1408_v29  ;;  %v1400_v46 = vor.u32 %v1931_v41, %v1399_v40  ;;  %v1375_v47 = vld [vmem:[#allocation4 + $0x60] sm:$0xf]  ;;  %v1926_v48 = vld [vmem:[#allocation4 + $0x6c] sm:$0xf0]  ;;  %v1924_v49 = vld [vmem:[#allocation4 + $0x64] sm:$0xf]  ;;  %v1404_v50 = vor.u32 %v1929_v42, %v1401_v43 }
  0x1a   :  { %322 = vmatpush.bf16.msra.mxu1 %v1412_v33  ;;  %v1377_v51 = vld [vmem:[#allocation4 + $0x70] sm:$0xf0]  ;;  %v1383_v52 = vld [vmem:[#allocation4 + $0x68] sm:$0xf]  ;;  %v1927_v53 = vld [vmem:[#allocation4 + $0x74] sm:$0xf0]  ;;  %v1376_v56 = vor.u32 %v1926_v48, %v1375_v47 }
  0x1b   :  { %335 = vmatpush.bf16.msra.mxu2 %v1416_v34  ;;  %348 = vmatpush.bf16.msra.mxu3 %v1420_v38  ;;  %v1925_v54 = vld [vmem:[#allocation4 + $0x6c] sm:$0xf]  ;;  %v1385_v55 = vld [vmem:[#allocation4 + $0x78] sm:$0xf0]  ;;  %v1380_v57 = vor.u32 %v1924_v49, %v1377_v51  ;;  %v1384_v58 = vor.u32 %v1927_v53, %v1383_v52  ;;  %v1359_v59 = vld [vmem:[#allocation4 + $0x40] sm:$0xf] }
  0x1c   :  { %v1922_v60 = vld [vmem:[#allocation4 + $0x4c] sm:$0xf0]  ;;  %v1920_v61 = vld [vmem:[#allocation4 + $0x44] sm:$0xf]  ;;  %v1388_v62 = vor.u32 %v1925_v54, %v1385_v55  ;;  %v1361_v63 = vld [vmem:[#allocation4 + $0x50] sm:$0xf0] }
  0x1d   :  { %310 = vmatpush.bf16.msra.mxu0 %v1392_v44  ;;  %v1367_v0 = vld [vmem:[#allocation4 + $0x48] sm:$0xf]  ;;  %v1923_v1 = vld [vmem:[#allocation4 + $0x54] sm:$0xf0]  ;;  %v1921_v2 = vld [vmem:[#allocation4 + $0x4c] sm:$0xf]  ;;  %v1360_v4 = vor.u32 %v1922_v60, %v1359_v59  ;;  %v1364_v5 = vor.u32 %v1920_v61, %v1361_v63 }
  0x1e   :  { %323 = vmatpush.bf16.msra.mxu1 %v1396_v45  ;;  %v1369_v3 = vld [vmem:[#allocation4 + $0x58] sm:$0xf0]  ;;  %v1368_v6 = vor.u32 %v1923_v1, %v1367_v0  ;;  %v1343_v7 = vld [vmem:[#allocation4 + $0x20] sm:$0xf]  ;;  %v1918_v8 = vld [vmem:[#allocation4 + $0x2c] sm:$0xf0] }
  0x1f   :  { %336 = vmatpush.bf16.msra.mxu2 %v1400_v46  ;;  %349 = vmatpush.bf16.msra.mxu3 %v1404_v50  ;;  %v1916_v9 = vld [vmem:[#allocation4 + $0x24] sm:$0xf]  ;;  %v1372_v10 = vor.u32 %v1921_v2, %v1369_v3  ;;  %v1345_v11 = vld [vmem:[#allocation4 + $0x30] sm:$0xf0]  ;;  %v1351_v12 = vld [vmem:[#allocation4 + $0x28] sm:$0xf]  ;;  %v1344_v16 = vor.u32 %v1918_v8, %v1343_v7 }
  0x20   :  { %v1919_v13 = vld [vmem:[#allocation4 + $0x34] sm:$0xf0]  ;;  %v1917_v14 = vld [vmem:[#allocation4 + $0x2c] sm:$0xf]  ;;  %v1353_v15 = vld [vmem:[#allocation4 + $0x38] sm:$0xf0]  ;;  %v1348_v19 = vor.u32 %v1916_v9, %v1345_v11 }
  0x21   :  { %311 = vmatpush.bf16.msra.mxu0 %v1376_v56  ;;  %v1327_v17 = vld [vmem:[#allocation4] sm:$0xf]  ;;  %v1914_v18 = vld [vmem:[#allocation4 + $0xc] sm:$0xf0]  ;;  %v1352_v20 = vor.u32 %v1919_v13, %v1351_v12  ;;  %v1912_v21 = vld [vmem:[#allocation4 + $0x4] sm:$0xf]  ;;  %v1356_v24 = vor.u32 %v1917_v14, %v1353_v15 }
  0x22   :  { %324 = vmatpush.bf16.msra.mxu1 %v1380_v57  ;;  %v1329_v22 = vld [vmem:[#allocation4 + $0x10] sm:$0xf0]  ;;  %v1335_v23 = vld [vmem:[#allocation4 + $0x8] sm:$0xf]  ;;  %v1915_v25 = vld [vmem:[#allocation4 + $0x14] sm:$0xf0]  ;;  %v1328_v31 = vor.u32 %v1914_v18, %v1327_v17 }
  0x23   :  { %337 = vmatpush.bf16.msra.mxu2 %v1384_v58  ;;  %350 = vmatpush.bf16.msra.mxu3 %v1388_v62  ;;  %v1913_v26 = vld [vmem:[#allocation4 + $0xc] sm:$0xf]  ;;  %v1337_v27 = vld [vmem:[#allocation4 + $0x18] sm:$0xf0]  ;;  %v1567_v28 = vld [vmem:[#allocation2 + $0xe0] sm:$0xf]  ;;  %v1332_v35 = vor.u32 %v1912_v21, %v1329_v22  ;;  %v1336_v36 = vor.u32 %v1915_v25, %v1335_v23 }
  0x24   :  { %v1910_v29 = vld [vmem:[#allocation2 + $0xec] sm:$0xf0]  ;;  %v1908_v30 = vld [vmem:[#allocation2 + $0xe4] sm:$0xf]  ;;  %v1569_v32 = vld [vmem:[#allocation2 + $0xf0] sm:$0xf0]  ;;  %v1340_v40 = vor.u32 %v1913_v26, %v1337_v27 }
  0x25   :  { %312 = vmatpush.bf16.msra.mxu0 %v1360_v4  ;;  %v1575_v33 = vld [vmem:[#allocation2 + $0xe8] sm:$0xf]  ;;  %v1911_v34 = vld [vmem:[#allocation2 + $0xf4] sm:$0xf0]  ;;  %v1909_v37 = vld [vmem:[#allocation2 + $0xec] sm:$0xf]  ;;  %v1568_v41 = vor.u32 %v1910_v29, %v1567_v28  ;;  %v1572_v42 = vor.u32 %v1908_v30, %v1569_v32 }
  0x26   :  { %325 = vmatpush.bf16.msra.mxu1 %v1364_v5  ;;  %v1577_v38 = vld [vmem:[#allocation2 + $0xf8] sm:$0xf0]  ;;  %v80_v39 = vld [vmem:[%s2261_s1] sm:$0xff]  ;;  %v1576_v43 = vor.u32 %v1911_v34, %v1575_v33  ;;  %v1906_v45 = vld [vmem:[#allocation2 + $0xcc] sm:$0xf0] }
  0x27   :  { %338 = vmatpush.bf16.msra.mxu2 %v1368_v6  ;;  %351 = vmatpush.bf16.msra.mxu3 %v1372_v10  ;;  %v1551_v44 = vld [vmem:[#allocation2 + $0xc0] sm:$0xf]  ;;  %v1904_v46 = vld [vmem:[#allocation2 + $0xc4] sm:$0xf]  ;;  %v1580_v47 = vor.u32 %v1909_v37, %v1577_v38  ;;  %v1553_v48 = vld [vmem:[#allocation2 + $0xd0] sm:$0xf0]  ;;  %v114_v51 = vpack.c.bf16 %v80_v39, %v80_v39 }
  0x28   :  { %v1559_v49 = vld [vmem:[#allocation2 + $0xc8] sm:$0xf]  ;;  %v1907_v50 = vld [vmem:[#allocation2 + $0xd4] sm:$0xf0]  ;;  %v1905_v52 = vld [vmem:[#allocation2 + $0xcc] sm:$0xf]  ;;  %v1552_v54 = vor.u32 %v1906_v45, %v1551_v44  ;;  %v1556_v55 = vor.u32 %v1904_v46, %v1553_v48 }
  0x29   :  { %313 = vmatpush.bf16.msra.mxu0 %v1344_v16  ;;  %v1561_v53 = vld [vmem:[#allocation2 + $0xd8] sm:$0xf0]  ;;  %v1560_v56 = vor.u32 %v1907_v50, %v1559_v49  ;;  %v1535_v57 = vld [vmem:[#allocation2 + $0xa0] sm:$0xf]  ;;  %v1902_v58 = vld [vmem:[#allocation2 + $0xac] sm:$0xf0] }
  0x2a   :  { %326 = vmatpush.bf16.msra.mxu1 %v1348_v19  ;;  %v1900_v59 = vld [vmem:[#allocation2 + $0xa4] sm:$0xf]  ;;  %v1564_v60 = vor.u32 %v1905_v52, %v1561_v53  ;;  %v1537_v61 = vld [vmem:[#allocation2 + $0xb0] sm:$0xf0]  ;;  %v1543_v62 = vld [vmem:[#allocation2 + $0xa8] sm:$0xf]  ;;  %v1536_v2 = vor.u32 %v1902_v58, %v1535_v57 }
  0x2b   :  { %339 = vmatpush.bf16.msra.mxu2 %v1352_v20  ;;  %352 = vmatpush.bf16.msra.mxu3 %v1356_v24  ;;  %v1903_v63 = vld [vmem:[#allocation2 + $0xb4] sm:$0xf0]  ;;  %v1901_v0 = vld [vmem:[#allocation2 + $0xac] sm:$0xf]  ;;  %v1545_v1 = vld [vmem:[#allocation2 + $0xb8] sm:$0xf0]  ;;  %v1540_v3 = vor.u32 %v1900_v59, %v1537_v61 }
  0x2c   :  { %v1544_v4 = vor.u32 %v1903_v63, %v1543_v62  ;;  %v1519_v5 = vld [vmem:[#allocation2 + $0x80] sm:$0xf]  ;;  %v1898_v6 = vld [vmem:[#allocation2 + $0x8c] sm:$0xf0]  ;;  %v1896_v7 = vld [vmem:[#allocation2 + $0x84] sm:$0xf]  ;;  %v1548_v8 = vor.u32 %v1901_v0, %v1545_v1 }
  0x2d   :  { %314 = vmatpush.bf16.msra.mxu0 %v1328_v31  ;;  %v1521_v9 = vld [vmem:[#allocation2 + $0x90] sm:$0xf0]  ;;  %v1527_v10 = vld [vmem:[#allocation2 + $0x88] sm:$0xf]  ;;  %v1899_v11 = vld [vmem:[#allocation2 + $0x94] sm:$0xf0]  ;;  %v1520_v14 = vor.u32 %v1898_v6, %v1519_v5 }
  0x2e   :  { %327 = vmatpush.bf16.msra.mxu1 %v1332_v35  ;;  %v1897_v12 = vld [vmem:[#allocation2 + $0x8c] sm:$0xf]  ;;  %v1529_v13 = vld [vmem:[#allocation2 + $0x98] sm:$0xf0]  ;;  %v1503_v15 = vld [vmem:[#allocation2 + $0x60] sm:$0xf]  ;;  %v1524_v16 = vor.u32 %v1896_v7, %v1521_v9  ;;  %v1528_v17 = vor.u32 %v1899_v11, %v1527_v10 }
  0x2f   :  { %340 = vmatpush.bf16.msra.mxu2 %v1336_v36  ;;  %353 = vmatpush.bf16.msra.mxu3 %v1340_v40  ;;  %v1894_v18 = vld [vmem:[#allocation2 + $0x6c] sm:$0xf0]  ;;  %v1892_v19 = vld [vmem:[#allocation2 + $0x64] sm:$0xf]  ;;  %v1505_v20 = vld [vmem:[#allocation2 + $0x70] sm:$0xf0]  ;;  %v1532_v21 = vor.u32 %v1897_v12, %v1529_v13 }
  0x30   :  { %315 = vmatmul.bf16.vlgmr.msra.gmra.mxu0 %v114_v51  ;;  %v1511_v22 = vld [vmem:[#allocation2 + $0x68] sm:$0xf]  ;;  %v1895_v23 = vld [vmem:[#allocation2 + $0x74] sm:$0xf0]  ;;  %v1893_v24 = vld [vmem:[#allocation2 + $0x6c] sm:$0xf]  ;;  %v1504_v26 = vor.u32 %v1894_v18, %v1503_v15  ;;  %v1508_v27 = vor.u32 %v1892_v19, %v1505_v20 }
  0x31   :  { %519 = vmatpush.bf16.msrb.mxu0 %v1568_v41  ;;  %328 = vmatmul.bf16.vlgmr.msra.gmra.mxu1 %v114_v51  ;;  %v1513_v25 = vld [vmem:[#allocation2 + $0x78] sm:$0xf0]  ;;  %v1512_v28 = vor.u32 %v1895_v23, %v1511_v22  ;;  %v1487_v29 = vld [vmem:[#allocation2 + $0x40] sm:$0xf]  ;;  %v1890_v30 = vld [vmem:[#allocation2 + $0x4c] sm:$0xf0] }
  0x32   :  { %532 = vmatpush.bf16.msrb.mxu1 %v1572_v42  ;;  %354 = vmatmul.bf16.vlgmr.msra.gmra.mxu3 %v114_v51  ;;  %v1888_v31 = vld [vmem:[#allocation2 + $0x44] sm:$0xf]  ;;  %v1516_v32 = vor.u32 %v1893_v24, %v1513_v25  ;;  %v1489_v33 = vld [vmem:[#allocation2 + $0x50] sm:$0xf0]  ;;  %v1495_v34 = vld [vmem:[#allocation2 + $0x48] sm:$0xf]  ;;  %v1488_v38 = vor.u32 %v1890_v30, %v1487_v29 }
  0x33   :  { %545 = vmatpush.bf16.msrb.mxu2 %v1576_v43  ;;  %558 = vmatpush.bf16.msrb.mxu3 %v1580_v47  ;;  %v1891_v35 = vld [vmem:[#allocation2 + $0x54] sm:$0xf0]  ;;  %v1889_v36 = vld [vmem:[#allocation2 + $0x4c] sm:$0xf]  ;;  %v1497_v37 = vld [vmem:[#allocation2 + $0x58] sm:$0xf0]  ;;  %v1492_v39 = vor.u32 %v1888_v31, %v1489_v33 }
  0x34   :  { %341 = vmatmul.bf16.vlgmr.msra.gmra.mxu2 %v114_v51  ;;  %v1496_v40 = vor.u32 %v1891_v35, %v1495_v34  ;;  %v1471_v41 = vld [vmem:[#allocation2 + $0x20] sm:$0xf]  ;;  %v1886_v42 = vld [vmem:[#allocation2 + $0x2c] sm:$0xf0]  ;;  %v1884_v43 = vld [vmem:[#allocation2 + $0x24] sm:$0xf]  ;;  %v1500_v44 = vor.u32 %v1889_v36, %v1497_v37 }
  0x35   :  { %520 = vmatpush.bf16.msrb.mxu0 %v1552_v54  ;;  %v1473_v45 = vld [vmem:[#allocation2 + $0x30] sm:$0xf0]  ;;  %v1479_v46 = vld [vmem:[#allocation2 + $0x28] sm:$0xf]  ;;  %v1887_v47 = vld [vmem:[#allocation2 + $0x34] sm:$0xf0]  ;;  %v1472_v50 = vor.u32 %v1886_v42, %v1471_v41 }
  0x36   :  { %533 = vmatpush.bf16.msrb.mxu1 %v1556_v55  ;;  %v1885_v48 = vld [vmem:[#allocation2 + $0x2c] sm:$0xf]  ;;  %v1481_v49 = vld [vmem:[#allocation2 + $0x38] sm:$0xf0]  ;;  %v1476_v51 = vor.u32 %v1884_v43, %v1473_v45  ;;  %v1480_v52 = vor.u32 %v1887_v47, %v1479_v46  ;;  %v1455_v53 = vld [vmem:[#allocation2] sm:$0xf] }
  0x37   :  { %546 = vmatpush.bf16.msrb.mxu2 %v1560_v56  ;;  %559 = vmatpush.bf16.msrb.mxu3 %v1564_v60  ;;  %v1882_v54 = vld [vmem:[#allocation2 + $0xc] sm:$0xf0]  ;;  %v1880_v55 = vld [vmem:[#allocation2 + $0x4] sm:$0xf]  ;;  %v1484_v56 = vor.u32 %v1885_v48, %v1481_v49  ;;  %v1457_v57 = vld [vmem:[#allocation2 + $0x10] sm:$0xf0] }
  0x38   :  { %v1463_v58 = vld [vmem:[#allocation2 + $0x8] sm:$0xf]  ;;  %v1883_v59 = vld [vmem:[#allocation2 + $0x14] sm:$0xf0]  ;;  %v1881_v60 = vld [vmem:[#allocation2 + $0xc] sm:$0xf]  ;;  %v1456_v62 = vor.u32 %v1882_v54, %v1455_v53  ;;  %v1460_v63 = vor.u32 %v1880_v55, %v1457_v57 }
  0x39   :  { %521 = vmatpush.bf16.msrb.mxu0 %v1536_v2  ;;  %v1465_v61 = vld [vmem:[#allocation2 + $0x18] sm:$0xf0]  ;;  %v1464_v0 = vor.u32 %v1883_v59, %v1463_v58  ;;  %v79_v2 = vld [vmem:[%s2260_s0] sm:$0xf]  ;;  %v2004_v5 = vld [vmem:[#allocation4 + $0x1e4] sm:$0xf] }
  0x3a   :  { %534 = vmatpush.bf16.msrb.mxu1 %v1540_v3  ;;  %v1468_v1 = vor.u32 %v1881_v60, %v1465_v61  ;;  %v1700_v3 = vld [vmem:[#allocation4 + $0x1e0] sm:$0xf]  ;;  %v1702_v7 = vld [vmem:[#allocation4 + $0x1f0] sm:$0xf0]  ;;  %v2007_v9 = vld [vmem:[#allocation4 + $0x1f4] sm:$0xf0] }
  0x3b   :  { %547 = vmatpush.bf16.msrb.mxu2 %v1544_v4  ;;  %560 = vmatpush.bf16.msrb.mxu3 %v1548_v8  ;;  %v2006_v4 = vld [vmem:[#allocation4 + $0x1ec] sm:$0xf0]  ;;  %v1708_v8 = vld [vmem:[#allocation4 + $0x1e8] sm:$0xf]  ;;  %v1705_v10 = vor.u32 %v2004_v5, %v1702_v7  ;;  %v2005_v12 = vld [vmem:[#allocation4 + $0x1ec] sm:$0xf] }
  0x3c   :  { %v1701_v6 = vor.u32 %v2006_v4, %v1700_v3  ;;  %v1709_v11 = vor.u32 %v2007_v9, %v1708_v8  ;;  %v1710_v13 = vld [vmem:[#allocation4 + $0x1f8] sm:$0xf0]  ;;  %v1686_v18 = vld [vmem:[#allocation4 + $0x1d0] sm:$0xf0]  ;;  %v2003_v22 = vld [vmem:[#allocation4 + $0x1d4] sm:$0xf0] }
  0x3d   :  { %522 = vmatpush.bf16.msrb.mxu0 %v1520_v14  ;;  %v1684_v14 = vld [vmem:[#allocation4 + $0x1c0] sm:$0xf]  ;;  %v1713_v15 = vor.u32 %v2005_v12, %v1710_v13  ;;  %v2001_v23 = vld [vmem:[#allocation4 + $0x1cc] sm:$0xf]  ;;  %v1694_v25 = vld [vmem:[#allocation4 + $0x1d8] sm:$0xf0] }
  0x3e   :  { %535 = vmatpush.bf16.msrb.mxu1 %v1524_v16  ;;  %v2002_v16 = vld [vmem:[#allocation4 + $0x1cc] sm:$0xf0]  ;;  %v1996_v29 = vld [vmem:[#allocation4 + $0x1a4] sm:$0xf]  ;;  %v1670_v31 = vld [vmem:[#allocation4 + $0x1b0] sm:$0xf0] }
  0x3f   :  { %548 = vmatpush.bf16.msrb.mxu2 %v1528_v17  ;;  %561 = vmatpush.bf16.msrb.mxu3 %v1532_v21  ;;  %v2000_v17 = vld [vmem:[#allocation4 + $0x1c4] sm:$0xf]  ;;  %v1685_v19 = vor.u32 %v2002_v16, %v1684_v14  ;;  %v1692_v21 = vld [vmem:[#allocation4 + $0x1c8] sm:$0xf]  ;;  %v1999_v33 = vld [vmem:[#allocation4 + $0x1b4] sm:$0xf0]  ;;  %v1673_v34 = vor.u32 %v1996_v29, %v1670_v31 }
  0x40   :  { %v1689_v20 = vor.u32 %v2000_v17, %v1686_v18  ;;  %v1693_v24 = vor.u32 %v2003_v22, %v1692_v21  ;;  %v1997_v36 = vld [vmem:[#allocation4 + $0x1ac] sm:$0xf]  ;;  %v1678_v37 = vld [vmem:[#allocation4 + $0x1b8] sm:$0xf0]  ;;  %v1992_v41 = vld [vmem:[#allocation4 + $0x184] sm:$0xf] }
  0x41   :  { %523 = vmatpush.bf16.msrb.mxu0 %v1504_v26  ;;  %v1697_v26 = vor.u32 %v2001_v23, %v1694_v25  ;;  %v1654_v43 = vld [vmem:[#allocation4 + $0x190] sm:$0xf0]  ;;  %v1995_v45 = vld [vmem:[#allocation4 + $0x194] sm:$0xf0]  ;;  %v1993_v48 = vld [vmem:[#allocation4 + $0x18c] sm:$0xf] }
  0x42   :  { %536 = vmatpush.bf16.msrb.mxu1 %v1508_v27  ;;  %v1668_v27 = vld [vmem:[#allocation4 + $0x1a0] sm:$0xf]  ;;  %v1657_v46 = vor.u32 %v1992_v41, %v1654_v43  ;;  %v1662_v49 = vld [vmem:[#allocation4 + $0x198] sm:$0xf0]  ;;  %v1990_v53 = vld [vmem:[#allocation4 + $0x16c] sm:$0xf0] }
  0x43   :  { %549 = vmatpush.bf16.msrb.mxu2 %v1512_v28  ;;  %562 = vmatpush.bf16.msrb.mxu3 %v1516_v32  ;;  %v1998_v28 = vld [vmem:[#allocation4 + $0x1ac] sm:$0xf0]  ;;  %v1676_v32 = vld [vmem:[#allocation4 + $0x1a8] sm:$0xf]  ;;  %v1638_v57 = vld [vmem:[#allocation4 + $0x170] sm:$0xf0] }
  0x44   :  { %v1669_v30 = vor.u32 %v1998_v28, %v1668_v27  ;;  %v1677_v35 = vor.u32 %v1999_v33, %v1676_v32  ;;  %v1644_v58 = vld [vmem:[#allocation4 + $0x168] sm:$0xf]  ;;  %v1991_v60 = vld [vmem:[#allocation4 + $0x174] sm:$0xf0]  ;;  %v1989_v61 = vld [vmem:[#allocation4 + $0x16c] sm:$0xf] }
  0x45   :  { %524 = vmatpush.bf16.msrb.mxu0 %v1488_v38  ;;  %v1681_v38 = vor.u32 %v1997_v36, %v1678_v37  ;;  %v1984_v3 = vld [vmem:[#allocation4 + $0x144] sm:$0xf]  ;;  %v1622_v5 = vld [vmem:[#allocation4 + $0x150] sm:$0xf0]  ;;  %v1987_v7 = vld [vmem:[#allocation4 + $0x154] sm:$0xf0] }
  0x46   :  { %537 = vmatpush.bf16.msrb.mxu1 %v1492_v39  ;;  %v1652_v39 = vld [vmem:[#allocation4 + $0x180] sm:$0xf]  ;;  %v1625_v8 = vor.u32 %v1984_v3, %v1622_v5  ;;  %v1982_v17 = vld [vmem:[#allocation4 + $0x12c] sm:$0xf0]  ;;  %v1980_v18 = vld [vmem:[#allocation4 + $0x124] sm:$0xf] }
  0x47   :  { %550 = vmatpush.bf16.msrb.mxu2 %v1496_v40  ;;  %563 = vmatpush.bf16.msrb.mxu3 %v1500_v44  ;;  %v1994_v40 = vld [vmem:[#allocation4 + $0x18c] sm:$0xf0]  ;;  %v1660_v44 = vld [vmem:[#allocation4 + $0x188] sm:$0xf]  ;;  %v1604_v16 = vld [vmem:[#allocation4 + $0x120] sm:$0xf] }
  0x48   :  { %v1653_v42 = vor.u32 %v1994_v40, %v1652_v39  ;;  %v1661_v47 = vor.u32 %v1995_v45, %v1660_v44  ;;  %v1606_v21 = vld [vmem:[#allocation4 + $0x130] sm:$0xf0]  ;;  %v1612_v22 = vld [vmem:[#allocation4 + $0x128] sm:$0xf]  ;;  %v1983_v23 = vld [vmem:[#allocation4 + $0x134] sm:$0xf0] }
  0x49   :  { %525 = vmatpush.bf16.msrb.mxu0 %v1472_v50  ;;  %v1665_v50 = vor.u32 %v1993_v48, %v1662_v49  ;;  %v1613_v25 = vor.u32 %v1983_v23, %v1612_v22  ;;  %v1614_v27 = vld [vmem:[#allocation4 + $0x138] sm:$0xf0]  ;;  %v1588_v29 = vld [vmem:[#allocation4 + $0x100] sm:$0xf]  ;;  %v1976_v31 = vld [vmem:[#allocation4 + $0x104] sm:$0xf] }
  0x4a   :  { %538 = vmatpush.bf16.msrb.mxu1 %v1476_v51  ;;  %v1590_v33 = vld [vmem:[#allocation4 + $0x110] sm:$0xf0]  ;;  %v1598_v39 = vld [vmem:[#allocation4 + $0x118] sm:$0xf0]  ;;  %v1828_v40 = vld [vmem:[#allocation2 + $0x1e0] sm:$0xf] }
  0x4b   :  { %551 = vmatpush.bf16.msrb.mxu2 %v1480_v52  ;;  %564 = vmatpush.bf16.msrb.mxu3 %v1484_v56  ;;  %v1636_v52 = vld [vmem:[#allocation4 + $0x160] sm:$0xf]  ;;  %v1988_v56 = vld [vmem:[#allocation4 + $0x164] sm:$0xf]  ;;  %v1593_v36 = vor.u32 %v1976_v31, %v1590_v33  ;;  %v1974_v43 = vld [vmem:[#allocation2 + $0x1ec] sm:$0xf0] }
  0x4c   :  { %v1637_v55 = vor.u32 %v1990_v53, %v1636_v52  ;;  %v1641_v59 = vor.u32 %v1988_v56, %v1638_v57  ;;  %v1972_v44 = vld [vmem:[#allocation2 + $0x1e4] sm:$0xf]  ;;  %v1830_v45 = vld [vmem:[#allocation2 + $0x1f0] sm:$0xf0]  ;;  %v1836_v49 = vld [vmem:[#allocation2 + $0x1e8] sm:$0xf] }
  0x4d   :  { %526 = vmatpush.bf16.msrb.mxu0 %v1456_v62  ;;  %v1646_v62 = vld [vmem:[#allocation4 + $0x178] sm:$0xf0]  ;;  %v1833_v48 = vor.u32 %v1972_v44, %v1830_v45  ;;  %v1973_v52 = vld [vmem:[#allocation2 + $0x1ec] sm:$0xf]  ;;  %v1812_v56 = vld [vmem:[#allocation2 + $0x1c0] sm:$0xf] }
  0x4e   :  { %539 = vmatpush.bf16.msrb.mxu1 %v1460_v63  ;;  %v1645_v63 = vor.u32 %v1991_v60, %v1644_v58  ;;  %v1970_v57 = vld [vmem:[#allocation2 + $0x1cc] sm:$0xf0]  ;;  %v1968_v60 = vld [vmem:[#allocation2 + $0x1c4] sm:$0xf]  ;;  %v1584_v5 = vld [vmem:[%s2261_s1 + $0x8] sm:$0xff] }
  0x4f   :  { %552 = vmatpush.bf16.msrb.mxu2 %v1464_v0  ;;  %565 = vmatpush.bf16.msrb.mxu3 %v1468_v1  ;;  %v1649_v0 = vor.u32 %v1989_v61, %v1646_v62  ;;  %v1620_v1 = vld [vmem:[#allocation4 + $0x140] sm:$0xf]  ;;  %v1814_v61 = vld [vmem:[#allocation2 + $0x1d0] sm:$0xf0]  ;;  %v1820_v62 = vld [vmem:[#allocation2 + $0x1c8] sm:$0xf] }
  0x50   :  { %527 = vmatmul.bf16.vlgmr.msrb.gmra.mxu0 %v79_v2  ;;  %v1780_v22 = vld [vmem:[#allocation2 + $0x180] sm:$0xf]  ;;  %v1962_v23 = vld [vmem:[#allocation2 + $0x18c] sm:$0xf0]  ;;  %v1790_v31 = vld [vmem:[#allocation2 + $0x198] sm:$0xf0] }
  0x51   :  { %540 = vmatmul.bf16.vlgmr.msrb.gmra.mxu1 %v79_v2  ;;  %882 = vmatpush.bf16.msra.mxu0 %v1701_v6  ;;  %v1628_v6 = vld [vmem:[#allocation4 + $0x148] sm:$0xf]  ;;  %v1959_v45 = vld [vmem:[#allocation2 + $0x174] sm:$0xf0] }
  0x52   :  { %553 = vmatmul.bf16.vlgmr.msrb.gmra.mxu2 %v79_v2  ;;  %566 = vmatmul.bf16.vlgmr.msrb.gmra.mxu3 %v79_v2  ;;  %v1986_v2 = vld [vmem:[#allocation4 + $0x14c] sm:$0xf0]  ;;  %v1629_v9 = vor.u32 %v1987_v7, %v1628_v6  ;;  %v688_v6 = vpack.c.bf16 %v1584_v5, %v1584_v5  ;;  %v1796_v7 = vld [vmem:[#allocation2 + $0x1a0] sm:$0xf]  ;;  %v1772_v44 = vld [vmem:[#allocation2 + $0x168] sm:$0xf] }
  0x53   :  { %895 = vmatpush.bf16.msra.mxu1 %v1705_v10  ;;  %908 = vmatpush.bf16.msra.mxu2 %v1709_v11  ;;  %v1621_v4 = vor.u32 %v1986_v2, %v1620_v1  ;;  %v1985_v10 = vld [vmem:[#allocation4 + $0x14c] sm:$0xf]  ;;  %v1630_v11 = vld [vmem:[#allocation4 + $0x158] sm:$0xf0]  ;;  %v1732_v5 = vld [vmem:[#allocation2 + $0x120] sm:$0xf] }
  0x54   :  { %921 = vmatpush.bf16.msra.mxu3 %v1713_v15  ;;  %v1633_v13 = vor.u32 %v1985_v10, %v1630_v11  ;;  %v1969_v1 = vld [vmem:[#allocation2 + $0x1cc] sm:$0xf]  ;;  %v1822_v2 = vld [vmem:[#allocation2 + $0x1d8] sm:$0xf0]  ;;  %v1798_v11 = vld [vmem:[#allocation2 + $0x1b0] sm:$0xf0] }
  0x55   :  { %883 = vmatpush.bf16.msra.mxu0 %v1685_v19 }
  0x57   :  { %896 = vmatpush.bf16.msra.mxu1 %v1689_v20  ;;  %909 = vmatpush.bf16.msra.mxu2 %v1693_v24  ;;  %v1605_v20 = vor.u32 %v1982_v17, %v1604_v16  ;;  %v1609_v24 = vor.u32 %v1980_v18, %v1606_v21  ;;  %v1965_v18 = vld [vmem:[#allocation2 + $0x1ac] sm:$0xf]  ;;  %v2223_v21 = vld [vmem:[%s2265_s5] sm:$0xf] }
  0x58   :  { %922 = vmatpush.bf16.msra.mxu3 %v1697_v26  ;;  %v1981_v26 = vld [vmem:[#allocation4 + $0x12c] sm:$0xf]  ;;  %v574_v33 = vperm.slane %v2223_v21, 1 }
  0x59   :  { %884 = vmatpush.bf16.msra.mxu0 %v1669_v30  ;;  %v1617_v28 = vor.u32 %v1981_v26, %v1614_v27  ;;  %v1978_v30 = vld [vmem:[#allocation4 + $0x10c] sm:$0xf0]  ;;  %v1782_v26 = vld [vmem:[#allocation2 + $0x190] sm:$0xf0]  ;;  %v1788_v27 = vld [vmem:[#allocation2 + $0x188] sm:$0xf] }
  0x5a   :  { %v1589_v32 = vor.u32 %v1978_v30, %v1588_v29  ;;  %v1963_v29 = vld [vmem:[#allocation2 + $0x194] sm:$0xf0]  ;;  %v1961_v30 = vld [vmem:[#allocation2 + $0x18c] sm:$0xf] }
  0x5b   :  { %897 = vmatpush.bf16.msra.mxu1 %v1673_v34  ;;  %910 = vmatpush.bf16.msra.mxu2 %v1677_v35  ;;  %v1596_v34 = vld [vmem:[#allocation4 + $0x108] sm:$0xf]  ;;  %v1979_v35 = vld [vmem:[#allocation4 + $0x114] sm:$0xf0] }
  0x5c   :  { %923 = vmatpush.bf16.msra.mxu3 %v1681_v38  ;;  %v1597_v37 = vor.u32 %v1979_v35, %v1596_v34  ;;  %v1977_v38 = vld [vmem:[#allocation4 + $0x10c] sm:$0xf]  ;;  %v1789_v34 = vor.u32 %v1963_v29, %v1788_v27  ;;  %v1793_v35 = vor.u32 %v1961_v30, %v1790_v31  ;;  %v1718_v29 = vld [vmem:[#allocation2 + $0x110] sm:$0xf0]  ;;  %v1724_v30 = vld [vmem:[#allocation2 + $0x108] sm:$0xf] }
  0x5d   :  { %885 = vmatpush.bf16.msra.mxu0 %v1653_v42  ;;  %v1601_v42 = vor.u32 %v1977_v38, %v1598_v39  ;;  %v1958_v38 = vld [vmem:[#allocation2 + $0x16c] sm:$0xf0]  ;;  %v1956_v39 = vld [vmem:[#allocation2 + $0x164] sm:$0xf]  ;;  %v1947_v31 = vld [vmem:[#allocation2 + $0x114] sm:$0xf0] }
  0x5f   :  { %898 = vmatpush.bf16.msra.mxu1 %v1657_v46  ;;  %911 = vmatpush.bf16.msra.mxu2 %v1661_v47  ;;  %v1829_v47 = vor.u32 %v1974_v43, %v1828_v40  ;;  %v1766_v43 = vld [vmem:[#allocation2 + $0x170] sm:$0xf0] }
  0x60   :  { %924 = vmatpush.bf16.msra.mxu3 %v1665_v50  ;;  %v1975_v50 = vld [vmem:[#allocation2 + $0x1f4] sm:$0xf0] }
  0x61   :  { %886 = vmatpush.bf16.msra.mxu0 %v1637_v55  ;;  %v1837_v53 = vor.u32 %v1975_v50, %v1836_v49  ;;  %v1838_v55 = vld [vmem:[#allocation2 + $0x1f8] sm:$0xf0]  ;;  %v1957_v49 = vld [vmem:[#allocation2 + $0x16c] sm:$0xf] }
  0x62   :  { %v1841_v58 = vor.u32 %v1973_v52, %v1838_v55  ;;  %v1774_v50 = vld [vmem:[#allocation2 + $0x178] sm:$0xf0] }
  0x63   :  { %899 = vmatpush.bf16.msra.mxu1 %v1641_v59  ;;  %912 = vmatpush.bf16.msra.mxu2 %v1645_v63  ;;  %v1813_v59 = vor.u32 %v1970_v57, %v1812_v56  ;;  %v1817_v63 = vor.u32 %v1968_v60, %v1814_v61  ;;  %v1777_v55 = vor.u32 %v1957_v49, %v1774_v50  ;;  %v1748_v56 = vld [vmem:[#allocation2 + $0x140] sm:$0xf]  ;;  %v1954_v57 = vld [vmem:[#allocation2 + $0x14c] sm:$0xf0]  ;;  %v1750_v61 = vld [vmem:[#allocation2 + $0x150] sm:$0xf0] }
  0x64   :  { %925 = vmatpush.bf16.msra.mxu3 %v1649_v0  ;;  %v1971_v0 = vld [vmem:[#allocation2 + $0x1d4] sm:$0xf0]  ;;  %v1749_v60 = vor.u32 %v1954_v57, %v1748_v56 }
  0x65   :  { %887 = vmatpush.bf16.msra.mxu0 %v1621_v4  ;;  %v1821_v3 = vor.u32 %v1971_v0, %v1820_v62  ;;  %v1825_v4 = vor.u32 %v1969_v1, %v1822_v2  ;;  %v1955_v0 = vld [vmem:[#allocation2 + $0x154] sm:$0xf0]  ;;  %v1953_v1 = vld [vmem:[#allocation2 + $0x14c] sm:$0xf] }
  0x67   :  { %900 = vmatpush.bf16.msra.mxu1 %v1625_v8  ;;  %913 = vmatpush.bf16.msra.mxu2 %v1629_v9  ;;  %v1966_v8 = vld [vmem:[#allocation2 + $0x1ac] sm:$0xf0]  ;;  %v1964_v9 = vld [vmem:[#allocation2 + $0x1a4] sm:$0xf] }
  0x68   :  { %926 = vmatpush.bf16.msra.mxu3 %v1633_v13  ;;  %v1797_v10 = vor.u32 %v1966_v8, %v1796_v7  ;;  %v1804_v13 = vld [vmem:[#allocation2 + $0x1a8] sm:$0xf]  ;;  %v1801_v16 = vor.u32 %v1964_v9, %v1798_v11  ;;  %v1734_v11 = vld [vmem:[#allocation2 + $0x130] sm:$0xf0] }
  0x69   :  { %888 = vmatpush.bf16.msra.mxu0 %v1605_v20 }
  0x6b   :  { %901 = vmatpush.bf16.msra.mxu1 %v1609_v24  ;;  %914 = vmatpush.bf16.msra.mxu2 %v1613_v25  ;;  %v1781_v24 = vor.u32 %v1962_v23, %v1780_v22  ;;  %v1960_v25 = vld [vmem:[#allocation2 + $0x184] sm:$0xf]  ;;  %v1742_v22 = vld [vmem:[#allocation2 + $0x138] sm:$0xf0] }
  0x6c   :  { %927 = vmatpush.bf16.msra.mxu3 %v1617_v28  ;;  %v1785_v28 = vor.u32 %v1960_v25, %v1782_v26  ;;  %v1946_v25 = vld [vmem:[#allocation2 + $0x10c] sm:$0xf0]  ;;  %v1944_v26 = vld [vmem:[#allocation2 + $0x104] sm:$0xf] }
  0x6d   :  { %889 = vmatpush.bf16.msra.mxu0 %v1589_v32  ;;  %v573_v32 = vperm.slane %v2223_v21, 0 }
  0x6f   :  { %902 = vmatpush.bf16.msra.mxu1 %v1593_v36  ;;  %915 = vmatpush.bf16.msra.mxu2 %v1597_v37  ;;  %v1764_v37 = vld [vmem:[#allocation2 + $0x160] sm:$0xf] }
  0x70   :  { %928 = vmatpush.bf16.msra.mxu3 %v1601_v42  ;;  %890 = vmatmul.bf16.vlgmr.msra.gmra.mxu0 %v688_v6  ;;  %v1765_v42 = vor.u32 %v1958_v38, %v1764_v37 }
  0x71   :  { %1094 = vmatpush.bf16.msrb.mxu0 %v1829_v47  ;;  %v1769_v47 = vor.u32 %v1956_v39, %v1766_v43  ;;  %v1725_v39 = vor.u32 %v1947_v31, %v1724_v30 }
  0x72   :  { %903 = vmatmul.bf16.vlgmr.msra.gmra.mxu1 %v688_v6  ;;  %916 = vmatmul.bf16.vlgmr.msra.gmra.mxu2 %v688_v6 }
  0x73   :  { %1107 = vmatpush.bf16.msrb.mxu1 %v1833_v48  ;;  %1120 = vmatpush.bf16.msrb.mxu2 %v1837_v53  ;;  %v1773_v48 = vor.u32 %v1959_v45, %v1772_v44  ;;  %v576_v53 = vperm.slane %v2223_v21, 3  ;;  %v575_v45 = vperm.slane %v2223_v21, 2 }
  0x74   :  { %1133 = vmatpush.bf16.msrb.mxu3 %v1841_v58  ;;  %v1952_v58 = vld [vmem:[#allocation2 + $0x144] sm:$0xf] }
  0x75   :  { %1095 = vmatpush.bf16.msrb.mxu0 %v1813_v59  ;;  %929 = vmatmul.bf16.vlgmr.msra.gmra.mxu3 %v688_v6  ;;  %v1950_v6 = vld [vmem:[#allocation2 + $0x12c] sm:$0xf0] }
  0x77   :  { %1108 = vmatpush.bf16.msrb.mxu1 %v1817_v63  ;;  %1121 = vmatpush.bf16.msrb.mxu2 %v1821_v3  ;;  %v1753_v63 = vor.u32 %v1952_v58, %v1750_v61 }
  0x78   :  { %1134 = vmatpush.bf16.msrb.mxu3 %v1825_v4  ;;  %v1758_v4 = vld [vmem:[#allocation2 + $0x158] sm:$0xf0] }
  0x79   :  { %1096 = vmatpush.bf16.msrb.mxu0 %v1797_v10  ;;  %v1761_v9 = vor.u32 %v1953_v1, %v1758_v4  ;;  %v1948_v10 = vld [vmem:[#allocation2 + $0x124] sm:$0xf] }
  0x7b   :  { %1109 = vmatpush.bf16.msrb.mxu1 %v1801_v16 }
  0x7d   :  { %1097 = vmatpush.bf16.msrb.mxu0 %v1781_v24  ;;  %v1716_v24 = vld [vmem:[#allocation2 + $0x100] sm:$0xf] }
  0x7f   :  { %1110 = vmatpush.bf16.msrb.mxu1 %v1785_v28 }
  0x81   :  { %1098 = vmatpush.bf16.msrb.mxu0 %v1765_v42 }
  0x83   :  { %1111 = vmatpush.bf16.msrb.mxu1 %v1769_v47 }
  0x85   :  { %1099 = vmatpush.bf16.msrb.mxu0 %v1749_v60 }
  0x87   :  { %1112 = vmatpush.bf16.msrb.mxu1 %v1753_v63 }
  0xad   :  { %v2209_v51 = vpop.f32.mrf.mxu0 }
  0xae   :  { %v2211_v54 = vpop.f32.mrf.mxu1 }
  0xb5   :  { %v2213_v12 = vpop.f32.mrf.mxu3  ;;  %v318_v14 = vpop.f32.mrf.mxu0 }
  0xb6   :  { %v331_v19 = vpop.f32.mrf.mxu1  ;;  %v1967_v14 = vld [vmem:[#allocation2 + $0x1b4] sm:$0xf0] }
  0xb7   :  { %v2215_v15 = vpop.f32.mrf.mxu2  ;;  %v1805_v17 = vor.u32 %v1967_v14, %v1804_v13  ;;  %v1806_v19 = vld [vmem:[#allocation2 + $0x1b8] sm:$0xf0]  ;;  %v1740_v13 = vld [vmem:[#allocation2 + $0x128] sm:$0xf] }
  0xb8   :  { %v1809_v20 = vor.u32 %v1965_v18, %v1806_v19  ;;  %v1737_v18 = vor.u32 %v1948_v10, %v1734_v11  ;;  %v1951_v19 = vld [vmem:[#allocation2 + $0x134] sm:$0xf0] }
  0xb9   :  { %1122 = vmatpush.bf16.msrb.mxu2 %v1805_v17  ;;  %v1733_v17 = vor.u32 %v1950_v6, %v1732_v5  ;;  %v1741_v23 = vor.u32 %v1951_v19, %v1740_v13 }
  0xba   :  { %1135 = vmatpush.bf16.msrb.mxu3 %v1809_v20  ;;  %v1949_v20 = vld [vmem:[#allocation2 + $0x12c] sm:$0xf]  ;;  %1113 = vmatpush.bf16.msrb.mxu1 %v1737_v18 }
  0xbb   :  { %v1745_v28 = vor.u32 %v1949_v20, %v1742_v22  ;;  %1100 = vmatpush.bf16.msrb.mxu0 %v1733_v17 }
  0xbd   :  { %v357_v41 = vpop.f32.mrf.mxu3  ;;  %1123 = vmatpush.bf16.msrb.mxu2 %v1789_v34 }
  0xbe   :  { %1136 = vmatpush.bf16.msrb.mxu3 %v1793_v35  ;;  %v1717_v35 = vor.u32 %v1946_v25, %v1716_v24 }
  0xbf   :  { %v344_v46 = vpop.f32.mrf.mxu2 }
  0xc0   :  { %1101 = vmatpush.bf16.msrb.mxu0 %v1717_v35  ;;  %v2012_v35 = vld [vmem:[#allocation6 + $0x20] sm:$0xff] }
  0xc1   :  { %1124 = vmatpush.bf16.msrb.mxu2 %v1773_v48 }
  0xc2   :  { %1137 = vmatpush.bf16.msrb.mxu3 %v1777_v55 }
  0xc6   :  { %1138 = vmatpush.bf16.msrb.mxu3 %v1761_v9 }
  0xca   :  { %1139 = vmatpush.bf16.msrb.mxu3 %v1745_v28 }
  0xcd   :  { %v528_v36 = vpop.f32.mrf.mxu0 }
  0xce   :  { %v529_v40 = vadd.f32 %v528_v36, %v2209_v51  ;;  %v541_v41 = vpop.f32.mrf.mxu1  ;;  %v1721_v36 = vor.u32 %v1944_v26, %v1718_v29 }
  0xcf   :  { %v542_v46 = vadd.f32 %v541_v41, %v2211_v54  ;;  %v1756_v54 = vld [vmem:[#allocation2 + $0x148] sm:$0xf] }
  0xd0   :  { %v581_v52 = vadd.f32 %v573_v32, %v529_v40  ;;  %v1757_v3 = vor.u32 %v1955_v0, %v1756_v54  ;;  %v1726_v32 = vld [vmem:[#allocation2 + $0x118] sm:$0xf0]  ;;  %1114 = vmatpush.bf16.msrb.mxu1 %v1721_v36  ;;  %v81_v0 = vld [vmem:[%s2262_s2] sm:$0xff] }
  0xd1   :  { %v582_v51 = vadd.f32 %v574_v33, %v542_v46 }
  0xd2   :  { %v1581_v59 = vmul.f32 -1.442695, %v581_v52  ;;  %1125 = vmatpush.bf16.msrb.mxu2 %v1757_v3 }
  0xd3   :  { %v1582_v62 = vmul.f32 -1.442695, %v582_v51 }
  0xd4   :  { %2024 = vpow2.f32 %v1581_v59 }
  0xd5   :  { %v554_v2 = vpop.f32.mrf.mxu2  ;;  %2026 = vpow2.f32 %v1582_v62  ;;  %v567_v7 = vpop.f32.mrf.mxu3 }
  0xd6   :  { %v530_v8 = vpop.f32.mrf.mxu0  ;;  %v568_v14 = vadd.f32 %v567_v7, %v2213_v12  ;;  %v543_v16 = vpop.f32.mrf.mxu1  ;;  %v1945_v12 = vld [vmem:[#allocation2 + $0x10c] sm:$0xf]  ;;  %1126 = vmatpush.bf16.msrb.mxu2 %v1741_v23  ;;  %v555_v44 = vadd.f32 %v554_v2, %v2215_v15 }
  0xd7   :  { %v1729_v42 = vor.u32 %v1945_v12, %v1726_v32  ;;  %v2015_v12 = vld [vmem:[#allocation6 + $0x38] sm:$0xff]  ;;  %v2014_v32 = vld [vmem:[#allocation6 + $0x30] sm:$0xff] }
  0xd8   :  { %v584_v27 = vadd.f32 %v576_v53, %v568_v14  ;;  %v583_v48 = vadd.f32 %v575_v45, %v555_v44  ;;  %1297 = vmatpush.bf16.msra.mxu0 %v2015_v12 }
  0xd9   :  { %1140 = vmatpush.bf16.msrb.mxu3 %v1729_v42  ;;  %v2011_v42 = vld [vmem:[#allocation6 + $0x18] sm:$0xff] }
  0xda   :  { %v2025_v33 = vpop.eup %2024  ;;  %v1583_v34 = vmul.f32 -1.442695, %v584_v27  ;;  %1127 = vmatpush.bf16.msrb.mxu2 %v1725_v39 }
  0xdb   :  { %v2027_v37 = vpop.eup %2026  ;;  %v588_v38 = vadd.f32 1.0, %v2025_v33  ;;  %v2013_v33 = vld [vmem:[#allocation6 + $0x28] sm:$0xff] }
  0xdc   :  { %v607_v40 = vadd.f32 1.0, %v2027_v37  ;;  %2028 = vpow2.f32 %v1583_v34  ;;  %1298 = vmatpush.bf16.msra.mxu0 %v2014_v32  ;;  %v1842_v34 = vld [vmem:[%s2265_s5 + $0x4] sm:$0xf] }
  0xdd   :  { %v556_v41 = vpop.f32.mrf.mxu2  ;;  %2030 = vrcp.f32 %v588_v38  ;;  %v569_v43 = vpop.f32.mrf.mxu3  ;;  %v600_v56 = vand.u32 2147483648, %v588_v38  ;;  %v598_v15 = vand.u32 2147483647, %v588_v38  ;;  %vm594_vm2 = vweird.f32 %v588_v38 }
  0xde   :  { %2032 = vrcp.f32 %v607_v40  ;;  %v619_v57 = vand.u32 2147483648, %v607_v40  ;;  %v617_v21 = vand.u32 2147483647, %v607_v40  ;;  %vm613_vm3 = vweird.f32 %v607_v40 }
  0xdf   :  { %v601_v54 = vor.u32 1.1754944e-38, %v600_v56  ;;  %vm599_vm6 = vcmp.eq.f32.partialorder %v598_v15, 8.507059e+37  ;;  %v1149_v36 = vperm.slane %v1842_v34, 0  ;;  %v1150_v37 = vperm.slane %v1842_v34, 1 }
  0xe0   :  { %v620_v63 = vor.u32 1.1754944e-38, %v619_v57  ;;  %vm618_vm7 = vcmp.eq.f32.partialorder %v617_v21, 8.507059e+37  ;;  %1299 = vmatpush.bf16.msra.mxu0 %v2013_v33  ;;  %v2008_v57 = vld [vmem:[#allocation6] sm:$0xff] }
  0xe2   :  { %v2029_v46 = vpop.eup %2028 }
  0xe3   :  { %v2031_v47 = vpop.eup %2030  ;;  %v627_v49 = vadd.f32 1.0, %v2029_v46 }
  0xe4   :  { %v2033_v50 = vpop.eup %2032  ;;  %v590_v52 = vmul.f32 %v2031_v47, %v588_v38  ;;  %vm595_vm0 = vweird.f32 %v2031_v47  ;;  %1300 = vmatpush.bf16.msra.mxu0 %v2012_v35 }
  0xe5   :  { %v609_v53 = vmul.f32 %v2033_v50, %v607_v40  ;;  %2034 = vrcp.f32 %v627_v49  ;;  %vm614_vm1 = vweird.f32 %v2033_v50  ;;  %vm596_vm4 = vmor %vm594_vm2, %vm595_vm0  ;;  %v639_v14 = vand.u32 2147483648, %v627_v49 }
  0xe6   :  { %v591_v55 = vsub.f32 1.0, %v590_v52  ;;  %2036 = vtanh.f32 %v583_v48  ;;  %vm615_vm5 = vmor %vm613_vm3, %vm614_vm1  ;;  %vm633_vm9 = vweird.f32 %v627_v49  ;;  %v637_v16 = vand.u32 2147483647, %v627_v49  ;;  %v2009_v52 = vld [vmem:[#allocation6 + $0x8] sm:$0xff] }
  0xe7   :  { %v610_v51 = vsub.f32 1.0, %v609_v53  ;;  %v640_v18 = vor.u32 1.1754944e-38, %v639_v14  ;;  %v1152_v48 = vperm.slane %v1842_v34, 3 }
  0xe8   :  { %v592_v58 = vmul.f32 %v2031_v47, %v591_v55  ;;  %vm638_vm11 = vcmp.eq.f32.partialorder %v637_v16, 8.507059e+37  ;;  %1301 = vmatpush.bf16.msra.mxu0 %v2011_v42 }
  0xe9   :  { %v611_v59 = vmul.f32 %v2033_v50, %v610_v51 }
  0xea   :  { %v593_v60 = vadd.f32 %v2031_v47, %v592_v58 }
  0xeb   :  { %v2035_v61 = vpop.eup %2034  ;;  %v612_v62 = vadd.f32 %v2033_v50, %v611_v59 }
  0xec   :  { %v597_v1 = vsel %vm596_vm4, %v2031_v47, %v593_v60  ;;  %v629_v2 = vmul.f32 %v2035_v61, %v627_v49  ;;  %v2037_v3 = vpop.eup %2036  ;;  %vm634_vm8 = vweird.f32 %v2035_v61  ;;  %v2010_v47 = vld [vmem:[#allocation6 + $0x10] sm:$0xff] }
  0xed   :  { %v602_v4 = vsel %vm599_vm6, %v601_v54, %v597_v1  ;;  %v616_v5 = vsel %vm615_vm5, %v2033_v50, %v612_v62  ;;  %vm635_vm10 = vmor %vm633_vm9, %vm634_vm8  ;;  %v891_v24 = vpop.f32.mrf.mxu0  ;;  %1302 = vmatpush.bf16.msra.mxu0 %v2010_v47 }
  0xee   :  { %v621_v6 = vsel %vm618_vm7, %v620_v63, %v616_v5  ;;  %v644_v7 = vmul.f32 %v2037_v3, %v602_v4  ;;  %v630_v8 = vsub.f32 1.0, %v629_v2  ;;  %v1151_v63 = vperm.slane %v1842_v34, 2 }
  0xef   :  { %v643_v9 = vmul.f32 %v621_v6, %v81_v0  ;;  %v904_v25 = vpop.f32.mrf.mxu1 }
  0xf0   :  { %v631_v10 = vmul.f32 %v2035_v61, %v630_v8 }
  0xf1   :  { %v645_v11 = vadd.f32 %v644_v7, %v643_v9  ;;  %1303 = vmatpush.bf16.msra.mxu0 %v2009_v52 }
  0xf2   :  { %v632_v13 = vadd.f32 %v2035_v61, %v631_v10 }
  0xf3   :  { %2038 = vtanh.f32 %v645_v11  ;;  %649 = vst [vmem:[%s2270_s10] sm:$0xff] %v645_v11 }
  0xf4   :  { %v636_v17 = vsel %vm635_vm10, %v2035_v61, %v632_v13 }
  0xf5   :  { %v641_v20 = vsel %vm638_vm11, %v640_v18, %v636_v17  ;;  %v893_v26 = vpop.f32.mrf.mxu0  ;;  %v917_v29 = vpop.f32.mrf.mxu2  ;;  %1304 = vmatpush.bf16.msra.mxu0 %v2008_v57 }
  0xf7   :  { %v906_v28 = vpop.f32.mrf.mxu1 }
  0xf8   :  { %v930_v27 = vpop.f32.mrf.mxu3 }
  0xf9   :  { %v2039_v19 = vpop.eup %2038 }
  0xfa   :  { %v647_v22 = vmul.f32 %v2039_v19, %v641_v20 }
  0xfc   :  { %648 = vst [vmem:[%s2269_s9] sm:$0xff] %v647_v22  ;;  %v650_v23 = vpack.c.bf16 %v647_v22, %v647_v22 }
  0xfd   :  { %v919_v31 = vpop.f32.mrf.mxu2 }
  0xfe   :  { %1102 = vmatmul.bf16.vlgmr.msrb.gmra.mxu0 %v650_v23  ;;  %1115 = vmatmul.bf16.vlgmr.msrb.gmra.mxu1 %v650_v23 }
  0xff   :  { %1128 = vmatmul.bf16.vlgmr.msrb.gmra.mxu2 %v650_v23  ;;  %1141 = vmatmul.bf16.vlgmr.msrb.gmra.mxu3 %v650_v23 }
 0x100   :  { %v932_v30 = vpop.f32.mrf.mxu3 }
 0x17b   :  { %v1103_v38 = vpop.f32.mrf.mxu0  ;;  %v1116_v39 = vpop.f32.mrf.mxu1 }
 0x17c   :  { %v1104_v40 = vadd.f32 %v1103_v38, %v891_v24  ;;  %v1117_v41 = vadd.f32 %v1116_v39, %v904_v25  ;;  %v1585_v24 = vld [vmem:[%s2262_s2 + $0x8] sm:$0xff] }
 0x17e   :  { %v1157_v43 = vadd.f32 %v1149_v36, %v1104_v40  ;;  %v1158_v44 = vadd.f32 %v1150_v37, %v1117_v41 }
 0x180   :  { %v1843_v45 = vmul.f32 -1.442695, %v1157_v43  ;;  %v1844_v46 = vmul.f32 -1.442695, %v1158_v44  ;;  %v2023_v43 = vld [vmem:[%s2267_s7] ss:$0 sm:$0xff] }
 0x182   :  { %2040 = vpow2.f32 %v1843_v45  ;;  %v1129_v49 = vpop.f32.mrf.mxu2  ;;  %v1142_v50 = vpop.f32.mrf.mxu3 }
 0x183   :  { %2042 = vpow2.f32 %v1844_v46  ;;  %v1143_v53 = vadd.f32 %v1142_v50, %v930_v27  ;;  %v1105_v55 = vpop.f32.mrf.mxu0  ;;  %v1118_v51 = vpop.f32.mrf.mxu1  ;;  %v1130_v62 = vadd.f32 %v1129_v49, %v917_v29 }
 0x185   :  { %v1160_v56 = vadd.f32 %v1152_v48, %v1143_v53  ;;  %v1159_v3 = vadd.f32 %v1151_v63, %v1130_v62 }
 0x187   :  { %v1845_v58 = vmul.f32 -1.442695, %v1160_v56 }
 0x188   :  { %v2041_v15 = vpop.eup %2040 }
 0x189   :  { %v2043_v59 = vpop.eup %2042  ;;  %v1164_v21 = vadd.f32 1.0, %v2041_v15  ;;  %2044 = vpow2.f32 %v1845_v58 }
 0x18a   :  { %v1183_v60 = vadd.f32 1.0, %v2043_v59  ;;  %v1131_v61 = vpop.f32.mrf.mxu2  ;;  %v1144_v54 = vpop.f32.mrf.mxu3 }
 0x18b   :  { %2046 = vrcp.f32 %v1164_v21  ;;  %v1176_v9 = vand.u32 2147483648, %v1164_v21  ;;  %v1174_v13 = vand.u32 2147483647, %v1164_v21  ;;  %vm1170_vm14 = vweird.f32 %v1164_v21 }
 0x18c   :  { %2048 = vrcp.f32 %v1183_v60  ;;  %v1195_v10 = vand.u32 2147483648, %v1183_v60  ;;  %v1193_v16 = vand.u32 2147483647, %v1183_v60  ;;  %vm1189_vm15 = vweird.f32 %v1183_v60 }
 0x18d   :  { %v1177_v19 = vor.u32 1.1754944e-38, %v1176_v9  ;;  %vm1175_vm2 = vcmp.eq.f32.partialorder %v1174_v13, 8.507059e+37 }
 0x18e   :  { %v1196_v23 = vor.u32 1.1754944e-38, %v1195_v10  ;;  %vm1194_vm3 = vcmp.eq.f32.partialorder %v1193_v16, 8.507059e+37 }
 0x18f   :  { %v2045_v0 = vpop.eup %2044 }
 0x190   :  { %v1203_v1 = vadd.f32 1.0, %v2045_v0 }
 0x191   :  { %v2047_v2 = vpop.eup %2046 }
 0x192   :  { %v2049_v4 = vpop.eup %2048  ;;  %v1166_v5 = vmul.f32 %v2047_v2, %v1164_v21  ;;  %2050 = vrcp.f32 %v1203_v1  ;;  %vm1171_vm12 = vweird.f32 %v2047_v2  ;;  %v1215_v35 = vand.u32 2147483648, %v1203_v1 }
 0x193   :  { %v1185_v6 = vmul.f32 %v2049_v4, %v1183_v60  ;;  %2052 = vtanh.f32 %v1159_v3  ;;  %vm1190_vm13 = vweird.f32 %v2049_v4  ;;  %vm1172_vm0 = vmor %vm1170_vm14, %vm1171_vm12  ;;  %vm1209_vm5 = vweird.f32 %v1203_v1 }
 0x194   :  { %v1167_v7 = vsub.f32 1.0, %v1166_v5  ;;  %vm1191_vm1 = vmor %vm1189_vm15, %vm1190_vm13  ;;  %v1213_v36 = vand.u32 2147483647, %v1203_v1  ;;  %v1216_v38 = vor.u32 1.1754944e-38, %v1215_v35 }
 0x195   :  { %v1186_v8 = vsub.f32 1.0, %v1185_v6 }
 0x196   :  { %v1168_v11 = vmul.f32 %v2047_v2, %v1167_v7  ;;  %vm1214_vm7 = vcmp.eq.f32.partialorder %v1213_v36, 8.507059e+37 }
 0x197   :  { %v1187_v14 = vmul.f32 %v2049_v4, %v1186_v8 }
 0x198   :  { %v2051_v17 = vpop.eup %2050  ;;  %v1169_v18 = vadd.f32 %v2047_v2, %v1168_v11 }
 0x199   :  { %v1188_v20 = vadd.f32 %v2049_v4, %v1187_v14  ;;  %v1205_v22 = vmul.f32 %v2051_v17, %v1203_v1  ;;  %v2053_v26 = vpop.eup %2052  ;;  %vm1210_vm4 = vweird.f32 %v2051_v17 }
 0x19a   :  { %v1173_v25 = vsel %vm1172_vm0, %v2047_v2, %v1169_v18  ;;  %vm1211_vm6 = vmor %vm1209_vm5, %vm1210_vm4 }
 0x19b   :  { %v1178_v27 = vsel %vm1175_vm2, %v1177_v19, %v1173_v25  ;;  %v1192_v28 = vsel %vm1191_vm1, %v2049_v4, %v1188_v20  ;;  %v1206_v29 = vsub.f32 1.0, %v1205_v22 }
 0x19c   :  { %v1197_v30 = vsel %vm1194_vm3, %v1196_v23, %v1192_v28  ;;  %v1220_v31 = vmul.f32 %v2053_v26, %v1178_v27 }
 0x19d   :  { %v1219_v12 = vmul.f32 %v1585_v24, %v1197_v30  ;;  %v1207_v32 = vmul.f32 %v2051_v17, %v1206_v29 }
 0x19f   :  { %v1221_v33 = vadd.f32 %v1220_v31, %v1219_v12  ;;  %v1208_v34 = vadd.f32 %v2051_v17, %v1207_v32 }
 0x1a1   :  { %2054 = vtanh.f32 %v1221_v33  ;;  %1847 = vst [vmem:[%s2270_s10 + $0x8] sm:$0xff] %v1221_v33  ;;  %v1212_v37 = vsel %vm1211_vm6, %v2051_v17, %v1208_v34 }
 0x1a2   :  { %v1217_v40 = vsel %vm1214_vm7, %v1216_v38, %v1212_v37 }
 0x1a7   :  { %v2055_v39 = vpop.eup %2054 }
 0x1a8   :  { %v1223_v41 = vmul.f32 %v2055_v39, %v1217_v40 }
 0x1aa   :  { %1846 = vst [vmem:[%s2269_s9 + $0x8] sm:$0xff] %v1223_v41  ;;  %v1228_v42 = vpack.c.bf16 %v1223_v41, %v1223_v41 }
 0x1ac   :  { %1305 = vmatmul.bf16.vlgmr.msra.gmra.mxu0 %v1228_v42 }
 0x229   :  { %v1306_v44 = vpop.f32.mrf.mxu0 }
 0x22a   :  { %v1307_v45 = vadd.f32 %v2023_v43, %v1306_v44 }
 0x22c   :  { %1310 = vst [vmem:[%s2268_s8] sm:$0xff] %v1307_v45 }
 0x231   :  { %v1308_v46 = vpop.f32.mrf.mxu0 }
 0x232   :  { %1323 = vsyncpa [#allocation3], 1 }
 0x233   :  { %1324 = vsyncpa [#allocation5], 1 }

</bundles_post_ra>
